<compile_context>
chip_gen: v7x
topology: tpu7x:2x2x1
jax: 0.10.0
libtpu: 0.0.40
codegen_flags: <defaults>
</compile_context>

<pallas_src>
import math
from functools import partial

import jax
import jax.numpy as jnp
from jax.experimental import pallas as pl
from jax.experimental.pallas import tpu as pltpu

VAR = 0.2 ** 2  # gaussian kernel variance (matches the torch module)


def _round_up(x, m):
    return (x + m - 1) // m * m


def _cdiv(a, b):
    return (a + b - 1) // b


def _pad_to(x, shape):
    pads = [(0, t - s) for s, t in zip(x.shape, shape)]
    if all(p == (0, 0) for p in pads):
        return x
    return jnp.pad(x, pads)


def _vmem_capacity_bytes():
    try:
        info = pltpu.get_tpu_info()
        cap = getattr(info, "vmem_capacity_bytes", None)
        if cap:
            return int(cap)
    except Exception:
        pass
    return 128 << 20  # v5e / v6e default


def _decoder_kernel(n_blocks, hid_p, act_dtype,
                    q_ref, pt_ref, fea_ref,
                    fc0_w, fc0_b, fc1_w, fc1_b,
                    fcc_w, fcc_b,
                    blkA_w, blkA_b, blkB_w, blkB_b,
                    fco_w, fco_b,
                    o_ref):
    f32 = jnp.float32

    q = q_ref[0]       # [tq, 3]            queries (f32)
    pt = pt_ref[0]     # [3, n_a]           anchors, pre-transposed (f32)
    fea = fea_ref[0]   # [n_a, dim_inp_p]   anchor features (f32)
    n_a = pt.shape[1]

    # ---- sample_point_feature: Gaussian kernel regression (all f32) ---------
    # Component-wise broadcast distance on the VPU: exact, and keeps a
    # nearly-empty K=3 contraction off the MXU (review item).
    d2 = jnp.zeros((q.shape[0], n_a), f32)
    for k in range(3):
        diff = q[:, k:k + 1] - pt[k:k + 1, :]          # [tq, n_a]
        d2 = d2 + diff * diff
    norm = jnp.sqrt(d2)
    # TODO(synk): approximate dist ~= -d2 (drop the sqrt term) once exact
    # numerics parity with the torch module is not required (saves an EUP pass).
    dist = -((norm + 1e-5) ** 2)                       # exact torch parity
    logits = dist * (1.0 / VAR)
    # Max-subtraction is exact under the normalisation below and prevents an
    # all-underflow 0/0 for queries far from every anchor.
    logits = logits - jnp.max(logits, axis=-1, keepdims=True)
    w = jnp.exp(logits)                                # [tq, n_a]
    w = w / jnp.sum(w, axis=-1, keepdims=True)         # exact f32 normalisation
    c = jnp.dot(w, fea, preferred_element_type=f32)    # [tq, dim_inp_p]

    # ---- ResNet-FC MLP head: bf16 matmul inputs, f32 accumulation ------------
    def dense(x, w_val, b_val):
        return jnp.dot(x.astype(act_dtype), w_val,
                       preferred_element_type=f32) + b_val

    lat = dense(c, fc0_w[...], fc0_b[...])                      # [tq, dim_p]
    net = dense(jax.nn.relu(lat), fc1_w[...], fc1_b[...])       # [tq, hid_p]
    # All n_blocks fc_c skip matmuls fused into a single wide-N matmul.
    skips = dense(lat, fcc_w[...], fcc_b[...])                  # [tq, nb*hid_p]
    for i in range(n_blocks):
        net = net + skips[:, i * hid_p:(i + 1) * hid_p]
        # ResnetBlockFC: x + fc_1(relu(fc_0(relu(x))))
        h = dense(jax.nn.relu(net), blkA_w[i], blkA_b[i])
        net = net + dense(jax.nn.relu(h), blkB_w[i], blkB_b[i])
    occ = dense(jax.nn.relu(net), fco_w[...], fco_b[...])       # [tq, out_p]
    o_ref[0] = occ


def point_interp_decoder(xyz_q, anchors, anchor_feats, params, *,
                         tq_max=None, matmul_dtype=jnp.bfloat16):
    B, n_q, _ = xyz_q.shape
    n_a = anchors.shape[1]
    dim_inp = anchor_feats.shape[2]
    dim = params["fc0_w"].shape[1]
    hid = params["fc1_w"].shape[1]
    out_dim = params["fco_w"].shape[1]
    n_blocks = params["fcc_w"].shape[0]

    # ---- MXU / lane alignment: pad feature dims to multiples of 128 ---------
    dim_inp_p = _round_up(dim_inp, 128)
    dim_p = _round_up(dim, 128)
    hid_p = _round_up(hid, 128)
    out_p = _round_up(out_dim, 128)     # lane-dense output block
    wbytes = jnp.dtype(matmul_dtype).itemsize

    # ---- per-chip query tiling -----------------------------------------------
    vmem_cap = _vmem_capacity_bytes()
    if tq_max is None:
        # 128 MiB VMEM (v5e/v6e): big tiles amortise per-step overhead and feed
        # the MXU; 64 MiB (v7x): smaller per-step footprint.
        tq_max = 512 if vmem_cap >= (96 << 20) else 256

    n_q16 = _round_up(n_q, 16)                 # bf16 sublane tile is (16, 128)
    tq = min(n_q16, _round_up(tq_max, 16))

    def footprint(t):
        f32 = 4
        w_elems = (dim_inp_p * dim_p + dim_p * hid_p + dim_p * n_blocks * hid_p
                   + 2 * n_blocks * hid_p * hid_p + hid_p * out_p)
        b_elems = dim_p + hid_p + n_blocks * hid_p + 2 * n_blocks * hid_p + out_p
        weights = 2 * (w_elems * wbytes + b_elems * f32)   # default double-buffer
        per_batch = 2 * (3 * n_a + n_a * dim_inp_p) * f32  # anchors^T + feats
        per_tile = 2 * (t * 3 + t * out_p) * f32           # q in + occ out
        acts = t * (3 * n_a + dim_inp_p + 2 * dim_p
                    + (n_blocks + 4) * hid_p + out_p) * f32
        return weights + per_batch + per_tile + acts

    # Shrink the query tile until the per-step footprint fits comfortably
    # (matters on v7x's 64 MiB VMEM with large n_a / dim_inp).
    while tq > 16 and footprint(tq) > int(0.5 * vmem_cap):
        tq = max(16, _round_up(tq // 2, 16))

    # Guarantee >= 2 grid steps so both v7x TensorCores (and the pipeline)
    # get work even for a single small batch.
    if B * _cdiv(n_q16, tq) < 2 and n_q16 >= 32:
        tq = _round_up(_cdiv(n_q16, 2), 16)

    nqt = _cdiv(n_q16, tq)
    n_q_pad = nqt * tq

    # TODO(synk): tile the anchor axis with an inner "arbitrary" grid dimension
    # plus an online-softmax accumulator when n_a * dim_inp alone overflows
    # v7x VMEM; current design keeps all anchors resident per batch.

    # ---- pad / cast inputs & weights (zero padding is exact) ----------------
    xyz_q_p = _pad_to(xyz_q.astype(jnp.float32), (B, n_q_pad, 3))
    anchors_t = jnp.transpose(anchors.astype(jnp.float32), (0, 2, 1))  # [B,3,n_a]
    feats_p = _pad_to(anchor_feats.astype(jnp.float32), (B, n_a, dim_inp_p))

    def wcast(x):
        return x.astype(matmul_dtype)

    # fc_c skip weights fused along the output axis: [dim_p, n_blocks*hid_p]
    fcc_w_cat = jnp.transpose(
        _pad_to(wcast(params["fcc_w"]), (n_blocks, dim_p, hid_p)),
        (1, 0, 2)).reshape(dim_p, n_blocks * hid_p)
    fcc_b_cat = jnp.transpose(
        _pad_to(params["fcc_b"].astype(jnp.float32), (n_blocks, 1, hid_p)),
        (1, 0, 2)).reshape(1, n_blocks * hid_p)

    weight_args = [
        _pad_to(wcast(params["fc0_w"]), (dim_inp_p, dim_p)),
        _pad_to(params["fc0_b"].astype(jnp.float32), (1, dim_p)),
        _pad_to(wcast(params["fc1_w"]), (dim_p, hid_p)),
        _pad_to(params["fc1_b"].astype(jnp.float32), (1, hid_p)),
        fcc_w_cat,
        fcc_b_cat,
        _pad_to(wcast(params["blkA_w"]), (n_blocks, hid_p, hid_p)),
        _pad_to(params["blkA_b"].astype(jnp.float32), (n_blocks, 1, hid_p)),
        _pad_to(wcast(params["blkB_w"]), (n_blocks, hid_p, hid_p)),
        _pad_to(params["blkB_b"].astype(jnp.float32), (n_blocks, 1, hid_p)),
        _pad_to(wcast(params["fco_w"]), (hid_p, out_p)),
        _pad_to(params["fco_b"].astype(jnp.float32), (1, out_p)),
    ]

    # ---- VMEM limit matching the pipeline mode actually used ----------------
    vmem_limit = int(1.4 * footprint(tq)) + (4 << 20)
    vmem_limit = max(vmem_limit, 32 << 20)
    vmem_limit = min(vmem_limit, int(0.85 * vmem_cap))

    def wspec(x):
        zeros = (0,) * x.ndim
        return pl.BlockSpec(x.shape, lambda b, t, _z=zeros: _z)

    in_specs = [
        pl.BlockSpec((1, tq, 3), lambda b, t: (b, t, 0)),
        pl.BlockSpec((1, 3, n_a), lambda b, t: (b, 0, 0)),
        pl.BlockSpec((1, n_a, dim_inp_p), lambda b, t: (b, 0, 0)),
    ] + [wspec(x) for x in weight_args]
    # TODO(synk): for very large n_q, write the padded out_p=128 block in bf16
    # (or use a narrow masked store) to cut the inflated HBM writeback.
    out_specs = pl.BlockSpec((1, tq, out_p), lambda b, t: (b, t, 0))

    occ_p = pl.pallas_call(
        partial(_decoder_kernel, n_blocks, hid_p, matmul_dtype),
        out_shape=jax.ShapeDtypeStruct((B, n_q_pad, out_p), jnp.float32),
        grid=(B, nqt),
        in_specs=in_specs,
        out_specs=out_specs,
        compiler_params=pltpu.CompilerParams(
            dimension_semantics=("parallel", "parallel"),
            vmem_limit_bytes=vmem_limit),
    )(xyz_q_p, anchors_t, feats_p, *weight_args)

    return occ_p[:, :n_q, :out_dim]


def init_params(key, dim_inp, dim, hidden_dim, out_dim, n_blocks):
    """torch nn.Linear-style U(-1/sqrt(fan_in), 1/sqrt(fan_in)) init.

    The residual-stack layers are scaled down (the original ResnetBlockFC
    zero-initialises fc_1.weight) so the randomly-initialised 5-block stack
    stays well-conditioned for the bf16-vs-f32 comparison in the self-test.
    """
    ks = jax.random.split(key, 12)

    def u(k, fan_in, shape, scale=1.0):
        b = scale / math.sqrt(fan_in)
        return jax.random.uniform(k, shape, jnp.float32, minval=-b, maxval=b)

    return {
        "fc0_w": u(ks[0], dim_inp, (dim_inp, dim)),
        "fc0_b": u(ks[1], dim_inp, (1, dim)),
        "fc1_w": u(ks[2], dim, (dim, hidden_dim)),
        "fc1_b": u(ks[3], dim, (1, hidden_dim)),
        "fcc_w": u(ks[4], dim, (n_blocks, dim, hidden_dim), 0.5),
        "fcc_b": u(ks[5], dim, (n_blocks, 1, hidden_dim), 0.5),
        "blkA_w": u(ks[6], hidden_dim, (n_blocks, hidden_dim, hidden_dim), 0.5),
        "blkA_b": u(ks[7], hidden_dim, (n_blocks, 1, hidden_dim), 0.5),
        "blkB_w": u(ks[8], hidden_dim, (n_blocks, hidden_dim, hidden_dim), 0.25),
        "blkB_b": u(ks[9], hidden_dim, (n_blocks, 1, hidden_dim), 0.25),
        "fco_w": u(ks[10], hidden_dim, (hidden_dim, out_dim)),
        "fco_b": u(ks[11], hidden_dim, (1, out_dim)),
    }


def reference(xyz_q, anchors, feats, params):
    """Pure-JAX f32 reference mirroring the torch forward pass."""
    P = jax.lax.Precision.HIGHEST
    diff = anchors[:, None, :, :] - xyz_q[:, :, None, :]          # [B,n_q,n_a,3]
    dist = -((jnp.linalg.norm(diff, axis=3) + 1e-5) ** 2)
    w = jnp.exp(dist / VAR)
    w = w / jnp.sum(w, axis=2, keepdims=True)
    c = jnp.einsum("bqa,bad->bqd", w, feats, precision=P)
    lat = jnp.einsum("bqd,de->bqe", c, params["fc0_w"], precision=P) + params["fc0_b"][0]
    net = (jnp.einsum("bqd,de->bqe", jax.nn.relu(lat), params["fc1_w"], precision=P)
           + params["fc1_b"][0])
    for i in range(params["fcc_w"].shape[0]):
        net = net + (jnp.einsum("bqd,de->bqe", lat, params["fcc_w"][i], precision=P)
                     + params["fcc_b"][i, 0])
        h = (jnp.einsum("bqd,de->bqe", jax.nn.relu(net), params["blkA_w"][i], precision=P)
             + params["blkA_b"][i, 0])
        dx = (jnp.einsum("bqd,de->bqe", jax.nn.relu(h), params["blkB_w"][i], precision=P)
              + params["blkB_b"][i, 0])
        net = net + dx
    occ = (jnp.einsum("bqd,de->bqe", jax.nn.relu(net), params["fco_w"], precision=P)
           + params["fco_b"][0])
    return occ


if __name__ == "__main__":
    B, n_q, n_a = 2, 16, 8
    dim_inp, dim, hidden_dim, out_dim, n_blocks = 32, 16, 32, 3, 5

    key = jax.random.PRNGKey(0)
    k_q, k_p, k_f, k_w = jax.random.split(key, 4)
    xyz_q = 0.3 * jax.random.normal(k_q, (B, n_q, 3), jnp.float32)
    anchors = 0.3 * jax.random.normal(k_p, (B, n_a, 3), jnp.float32)
    anchor_feats = jax.random.normal(k_f, (B, n_a, dim_inp), jnp.float32)
    params = init_params(k_w, dim_inp, dim, hidden_dim, out_dim, n_blocks)

    occ = jax.block_until_ready(
        point_interp_decoder(xyz_q, anchors, anchor_feats, params))
    ref = jax.block_until_ready(reference(xyz_q, anchors, anchor_feats, params))

    assert occ.shape == (B, n_q, out_dim), occ.shape
    # The kernel uses bf16 matmul inputs with f32 accumulation; compare against
    # the HIGHEST-precision f32 reference at a bf16-level tolerance.
    err = float(jnp.max(jnp.abs(occ - ref)))
    ref_scale = float(jnp.max(jnp.abs(ref)))
    assert err <= 1e-2 + 2e-2 * ref_scale, (err, ref_scale)

    print("KERNEL_OK")
</pallas_src>

<mosaic_0001>
module attributes {stable_mosaic.version = 11 : i64} {
  func.func @_decoder_kernel(%arg0: i32, %arg1: i32, %arg2: memref<1x16x3xf32, #tpu.memory_space<vmem>>, %arg3: memref<1x3x8xf32, #tpu.memory_space<vmem>>, %arg4: memref<1x8x128xf32, #tpu.memory_space<vmem>>, %arg5: memref<128x128xbf16, #tpu.memory_space<vmem>>, %arg6: memref<1x128xf32, #tpu.memory_space<vmem>>, %arg7: memref<128x128xbf16, #tpu.memory_space<vmem>>, %arg8: memref<1x128xf32, #tpu.memory_space<vmem>>, %arg9: memref<128x640xbf16, #tpu.memory_space<vmem>>, %arg10: memref<1x640xf32, #tpu.memory_space<vmem>>, %arg11: memref<5x128x128xbf16, #tpu.memory_space<vmem>>, %arg12: memref<5x1x128xf32, #tpu.memory_space<vmem>>, %arg13: memref<5x128x128xbf16, #tpu.memory_space<vmem>>, %arg14: memref<5x1x128xf32, #tpu.memory_space<vmem>>, %arg15: memref<128x128xbf16, #tpu.memory_space<vmem>>, %arg16: memref<1x128xf32, #tpu.memory_space<vmem>>, %arg17: memref<1x16x128xf32, #tpu.memory_space<vmem>>) attributes {dimension_semantics = [#tpu.dimension_semantics<parallel>, #tpu.dimension_semantics<parallel>], iteration_bounds = array<i64: 2, 1>, scalar_prefetch = 0 : i64, scratch_operands = 0 : i64, tpu.core_type = #tpu.core_type<tc>, window_params = [{transform_indices = @transform_0, window_bounds = array<i64: 1, 16, 3>}, {transform_indices = @transform_1, window_bounds = array<i64: 1, 3, 8>}, {transform_indices = @transform_2, window_bounds = array<i64: 1, 8, 128>}, {pipeline_mode = #tpu.pipeline_mode<synchronous>, transform_indices = @transform_3, window_bounds = array<i64: 128, 128>}, {pipeline_mode = #tpu.pipeline_mode<synchronous>, transform_indices = @transform_4, window_bounds = array<i64: 1, 128>}, {pipeline_mode = #tpu.pipeline_mode<synchronous>, transform_indices = @transform_5, window_bounds = array<i64: 128, 128>}, {pipeline_mode = #tpu.pipeline_mode<synchronous>, transform_indices = @transform_6, window_bounds = array<i64: 1, 128>}, {pipeline_mode = #tpu.pipeline_mode<synchronous>, transform_indices = @transform_7, window_bounds = array<i64: 128, 640>}, {pipeline_mode = #tpu.pipeline_mode<synchronous>, transform_indices = @transform_8, window_bounds = array<i64: 1, 640>}, {pipeline_mode = #tpu.pipeline_mode<synchronous>, transform_indices = @transform_9, window_bounds = array<i64: 5, 128, 128>}, {pipeline_mode = #tpu.pipeline_mode<synchronous>, transform_indices = @transform_10, window_bounds = array<i64: 5, 1, 128>}, {pipeline_mode = #tpu.pipeline_mode<synchronous>, transform_indices = @transform_11, window_bounds = array<i64: 5, 128, 128>}, {pipeline_mode = #tpu.pipeline_mode<synchronous>, transform_indices = @transform_12, window_bounds = array<i64: 5, 1, 128>}, {pipeline_mode = #tpu.pipeline_mode<synchronous>, transform_indices = @transform_13, window_bounds = array<i64: 128, 128>}, {pipeline_mode = #tpu.pipeline_mode<synchronous>, transform_indices = @transform_14, window_bounds = array<i64: 1, 128>}, {transform_indices = @transform_15, window_bounds = array<i64: 1, 16, 128>}]} {
    %c0 = arith.constant 0 : index
    %c0_0 = arith.constant 0 : index
    %c0_1 = arith.constant 0 : index
    %0 = vector.load %arg2[%c0, %c0_0, %c0_1] : memref<1x16x3xf32, #tpu.memory_space<vmem>>, vector<1x16x3xf32>
    %1 = vector.shape_cast %0 : vector<1x16x3xf32> to vector<16x3xf32>
    %c0_2 = arith.constant 0 : index
    %c0_3 = arith.constant 0 : index
    %c0_4 = arith.constant 0 : index
    %2 = vector.load %arg3[%c0_2, %c0_3, %c0_4] : memref<1x3x8xf32, #tpu.memory_space<vmem>>, vector<1x3x8xf32>
    %3 = vector.shape_cast %2 : vector<1x3x8xf32> to vector<3x8xf32>
    %c0_5 = arith.constant 0 : index
    %c0_6 = arith.constant 0 : index
    %c0_7 = arith.constant 0 : index
    %4 = vector.load %arg4[%c0_5, %c0_6, %c0_7] : memref<1x8x128xf32, #tpu.memory_space<vmem>>, vector<1x8x128xf32>
    %5 = vector.shape_cast %4 : vector<1x8x128xf32> to vector<8x128xf32>
    %cst = arith.constant 0.000000e+00 : f32
    %6 = vector.broadcast %cst : f32 to vector<16x8xf32>
    %7 = vector.extract_strided_slice %1 {offsets = [0, 0], sizes = [16, 1], strides = [1, 1]} : vector<16x3xf32> to vector<16x1xf32>
    %8 = vector.extract_strided_slice %3 {offsets = [0, 0], sizes = [1, 8], strides = [1, 1]} : vector<3x8xf32> to vector<1x8xf32>
    %9 = vector.broadcast %7 : vector<16x1xf32> to vector<16x8xf32>
    %10 = vector.broadcast %8 : vector<1x8xf32> to vector<16x8xf32>
    %11 = arith.subf %9, %10 : vector<16x8xf32>
    %12 = arith.mulf %11, %11 : vector<16x8xf32>
    %13 = arith.addf %6, %12 : vector<16x8xf32>
    %14 = vector.extract_strided_slice %1 {offsets = [0, 1], sizes = [16, 1], strides = [1, 1]} : vector<16x3xf32> to vector<16x1xf32>
    %15 = vector.extract_strided_slice %3 {offsets = [1, 0], sizes = [1, 8], strides = [1, 1]} : vector<3x8xf32> to vector<1x8xf32>
    %16 = vector.broadcast %14 : vector<16x1xf32> to vector<16x8xf32>
    %17 = vector.broadcast %15 : vector<1x8xf32> to vector<16x8xf32>
    %18 = arith.subf %16, %17 : vector<16x8xf32>
    %19 = arith.mulf %18, %18 : vector<16x8xf32>
    %20 = arith.addf %13, %19 : vector<16x8xf32>
    %21 = vector.extract_strided_slice %1 {offsets = [0, 2], sizes = [16, 1], strides = [1, 1]} : vector<16x3xf32> to vector<16x1xf32>
    %22 = vector.extract_strided_slice %3 {offsets = [2, 0], sizes = [1, 8], strides = [1, 1]} : vector<3x8xf32> to vector<1x8xf32>
    %23 = vector.broadcast %21 : vector<16x1xf32> to vector<16x8xf32>
    %24 = vector.broadcast %22 : vector<1x8xf32> to vector<16x8xf32>
    %25 = arith.subf %23, %24 : vector<16x8xf32>
    %26 = arith.mulf %25, %25 : vector<16x8xf32>
    %27 = arith.addf %20, %26 : vector<16x8xf32>
    %28 = math.sqrt %27 : vector<16x8xf32>
    %cst_8 = arith.constant 9.99999974E-6 : f32
    %29 = vector.broadcast %cst_8 : f32 to vector<16x8xf32>
    %30 = arith.addf %28, %29 : vector<16x8xf32>
    %31 = arith.mulf %30, %30 : vector<16x8xf32>
    %cst_9 = arith.constant 0.000000e+00 : f32
    %32 = vector.broadcast %cst_9 : f32 to vector<16x8xf32>
    %33 = arith.subf %32, %31 : vector<16x8xf32>
    %cst_10 = arith.constant 2.500000e+01 : f32
    %34 = vector.broadcast %cst_10 : f32 to vector<16x8xf32>
    %35 = arith.mulf %33, %34 : vector<16x8xf32>
    %cst_11 = arith.constant dense<0xFF800000> : vector<16xf32>
    %36 = vector.multi_reduction <maximumf>, %35, %cst_11 [1] : vector<16x8xf32> to vector<16xf32>
    %37 = vector.shape_cast %36 : vector<16xf32> to vector<16x1xf32>
    %38 = vector.broadcast %37 : vector<16x1xf32> to vector<16x8xf32>
    %39 = arith.subf %35, %38 : vector<16x8xf32>
    %40 = math.exp %39 : vector<16x8xf32>
    %cst_12 = arith.constant dense<0.000000e+00> : vector<16xf32>
    %41 = vector.multi_reduction <add>, %40, %cst_12 [1] : vector<16x8xf32> to vector<16xf32>
    %42 = vector.shape_cast %41 : vector<16xf32> to vector<16x1xf32>
    %43 = vector.broadcast %42 : vector<16x1xf32> to vector<16x8xf32>
    %44 = arith.divf %40, %43 : vector<16x8xf32>
    %cst_13 = arith.constant dense<0.000000e+00> : vector<16x128xf32>
    %45 = tpu.matmul %44, %5, %cst_13 {dimension_numbers = #tpu.dot_dimension_numbers<[1], [0], [0], [1], [0, 0, 1, 1], [], []>} : vector<16x8xf32>, vector<8x128xf32>, vector<16x128xf32> -> vector<16x128xf32>
    %c0_14 = arith.constant 0 : index
    %c0_15 = arith.constant 0 : index
    %46 = vector.load %arg5[%c0_14, %c0_15] : memref<128x128xbf16, #tpu.memory_space<vmem>>, vector<128x128xbf16>
    %c0_16 = arith.constant 0 : index
    %c0_17 = arith.constant 0 : index
    %47 = vector.load %arg6[%c0_16, %c0_17] : memref<1x128xf32, #tpu.memory_space<vmem>>, vector<1x128xf32>
    %48 = arith.truncf %45 : vector<16x128xf32> to vector<16x128xbf16>
    %cst_18 = arith.constant dense<0.000000e+00> : vector<16x128xf32>
    %49 = tpu.matmul %48, %46, %cst_18 {dimension_numbers = #tpu.dot_dimension_numbers<[1], [0], [0], [1], [0, 0, 1, 1], [], []>} : vector<16x128xbf16>, vector<128x128xbf16>, vector<16x128xf32> -> vector<16x128xf32>
    %50 = vector.broadcast %47 : vector<1x128xf32> to vector<16x128xf32>
    %51 = arith.addf %49, %50 : vector<16x128xf32>
    %cst_19 = arith.constant 0.000000e+00 : f32
    %52 = vector.broadcast %cst_19 : f32 to vector<16x128xf32>
    %53 = arith.maximumf %51, %52 : vector<16x128xf32>
    %c0_20 = arith.constant 0 : index
    %c0_21 = arith.constant 0 : index
    %54 = vector.load %arg7[%c0_20, %c0_21] : memref<128x128xbf16, #tpu.memory_space<vmem>>, vector<128x128xbf16>
    %c0_22 = arith.constant 0 : index
    %c0_23 = arith.constant 0 : index
    %55 = vector.load %arg8[%c0_22, %c0_23] : memref<1x128xf32, #tpu.memory_space<vmem>>, vector<1x128xf32>
    %56 = arith.truncf %53 : vector<16x128xf32> to vector<16x128xbf16>
    %cst_24 = arith.constant dense<0.000000e+00> : vector<16x128xf32>
    %57 = tpu.matmul %56, %54, %cst_24 {dimension_numbers = #tpu.dot_dimension_numbers<[1], [0], [0], [1], [0, 0, 1, 1], [], []>} : vector<16x128xbf16>, vector<128x128xbf16>, vector<16x128xf32> -> vector<16x128xf32>
    %58 = vector.broadcast %55 : vector<1x128xf32> to vector<16x128xf32>
    %59 = arith.addf %57, %58 : vector<16x128xf32>
    %c0_25 = arith.constant 0 : index
    %c0_26 = arith.constant 0 : index
    %60 = vector.load %arg9[%c0_25, %c0_26] : memref<128x640xbf16, #tpu.memory_space<vmem>>, vector<128x640xbf16>
    %c0_27 = arith.constant 0 : index
    %c0_28 = arith.constant 0 : index
    %61 = vector.load %arg10[%c0_27, %c0_28] : memref<1x640xf32, #tpu.memory_space<vmem>>, vector<1x640xf32>
    %62 = arith.truncf %51 : vector<16x128xf32> to vector<16x128xbf16>
    %cst_29 = arith.constant dense<0.000000e+00> : vector<16x640xf32>
    %63 = tpu.matmul %62, %60, %cst_29 {dimension_numbers = #tpu.dot_dimension_numbers<[1], [0], [0], [1], [0, 0, 1, 1], [], []>} : vector<16x128xbf16>, vector<128x640xbf16>, vector<16x640xf32> -> vector<16x640xf32>
    %64 = vector.broadcast %61 : vector<1x640xf32> to vector<16x640xf32>
    %65 = arith.addf %63, %64 : vector<16x640xf32>
    %66 = vector.extract_strided_slice %65 {offsets = [0, 0], sizes = [16, 128], strides = [1, 1]} : vector<16x640xf32> to vector<16x128xf32>
    %67 = arith.addf %59, %66 : vector<16x128xf32>
    %cst_30 = arith.constant 0.000000e+00 : f32
    %68 = vector.broadcast %cst_30 : f32 to vector<16x128xf32>
    %69 = arith.maximumf %67, %68 : vector<16x128xf32>
    %c0_31 = arith.constant 0 : index
    %c0_32 = arith.constant 0 : index
    %c0_33 = arith.constant 0 : index
    %70 = vector.load %arg11[%c0_31, %c0_32, %c0_33] : memref<5x128x128xbf16, #tpu.memory_space<vmem>>, vector<1x128x128xbf16>
    %71 = vector.shape_cast %70 : vector<1x128x128xbf16> to vector<128x128xbf16>
    %c0_34 = arith.constant 0 : index
    %c0_35 = arith.constant 0 : index
    %c0_36 = arith.constant 0 : index
    %72 = vector.load %arg12[%c0_34, %c0_35, %c0_36] : memref<5x1x128xf32, #tpu.memory_space<vmem>>, vector<1x1x128xf32>
    %73 = vector.shape_cast %72 : vector<1x1x128xf32> to vector<1x128xf32>
    %74 = arith.truncf %69 : vector<16x128xf32> to vector<16x128xbf16>
    %cst_37 = arith.constant dense<0.000000e+00> : vector<16x128xf32>
    %75 = tpu.matmul %74, %71, %cst_37 {dimension_numbers = #tpu.dot_dimension_numbers<[1], [0], [0], [1], [0, 0, 1, 1], [], []>} : vector<16x128xbf16>, vector<128x128xbf16>, vector<16x128xf32> -> vector<16x128xf32>
    %76 = vector.broadcast %73 : vector<1x128xf32> to vector<16x128xf32>
    %77 = arith.addf %75, %76 : vector<16x128xf32>
    %cst_38 = arith.constant 0.000000e+00 : f32
    %78 = vector.broadcast %cst_38 : f32 to vector<16x128xf32>
    %79 = arith.maximumf %77, %78 : vector<16x128xf32>
    %c0_39 = arith.constant 0 : index
    %c0_40 = arith.constant 0 : index
    %c0_41 = arith.constant 0 : index
    %80 = vector.load %arg13[%c0_39, %c0_40, %c0_41] : memref<5x128x128xbf16, #tpu.memory_space<vmem>>, vector<1x128x128xbf16>
    %81 = vector.shape_cast %80 : vector<1x128x128xbf16> to vector<128x128xbf16>
    %c0_42 = arith.constant 0 : index
    %c0_43 = arith.constant 0 : index
    %c0_44 = arith.constant 0 : index
    %82 = vector.load %arg14[%c0_42, %c0_43, %c0_44] : memref<5x1x128xf32, #tpu.memory_space<vmem>>, vector<1x1x128xf32>
    %83 = vector.shape_cast %82 : vector<1x1x128xf32> to vector<1x128xf32>
    %84 = arith.truncf %79 : vector<16x128xf32> to vector<16x128xbf16>
    %cst_45 = arith.constant dense<0.000000e+00> : vector<16x128xf32>
    %85 = tpu.matmul %84, %81, %cst_45 {dimension_numbers = #tpu.dot_dimension_numbers<[1], [0], [0], [1], [0, 0, 1, 1], [], []>} : vector<16x128xbf16>, vector<128x128xbf16>, vector<16x128xf32> -> vector<16x128xf32>
    %86 = vector.broadcast %83 : vector<1x128xf32> to vector<16x128xf32>
    %87 = arith.addf %85, %86 : vector<16x128xf32>
    %88 = arith.addf %67, %87 : vector<16x128xf32>
    %89 = vector.extract_strided_slice %65 {offsets = [0, 128], sizes = [16, 128], strides = [1, 1]} : vector<16x640xf32> to vector<16x128xf32>
    %90 = arith.addf %88, %89 : vector<16x128xf32>
    %cst_46 = arith.constant 0.000000e+00 : f32
    %91 = vector.broadcast %cst_46 : f32 to vector<16x128xf32>
    %92 = arith.maximumf %90, %91 : vector<16x128xf32>
    %c1 = arith.constant 1 : index
    %c0_47 = arith.constant 0 : index
    %c0_48 = arith.constant 0 : index
    %93 = vector.load %arg11[%c1, %c0_47, %c0_48] : memref<5x128x128xbf16, #tpu.memory_space<vmem>>, vector<1x128x128xbf16>
    %94 = vector.shape_cast %93 : vector<1x128x128xbf16> to vector<128x128xbf16>
    %c1_49 = arith.constant 1 : index
    %c0_50 = arith.constant 0 : index
    %c0_51 = arith.constant 0 : index
    %95 = vector.load %arg12[%c1_49, %c0_50, %c0_51] : memref<5x1x128xf32, #tpu.memory_space<vmem>>, vector<1x1x128xf32>
    %96 = vector.shape_cast %95 : vector<1x1x128xf32> to vector<1x128xf32>
    %97 = arith.truncf %92 : vector<16x128xf32> to vector<16x128xbf16>
    %cst_52 = arith.constant dense<0.000000e+00> : vector<16x128xf32>
    %98 = tpu.matmul %97, %94, %cst_52 {dimension_numbers = #tpu.dot_dimension_numbers<[1], [0], [0], [1], [0, 0, 1, 1], [], []>} : vector<16x128xbf16>, vector<128x128xbf16>, vector<16x128xf32> -> vector<16x128xf32>
    %99 = vector.broadcast %96 : vector<1x128xf32> to vector<16x128xf32>
    %100 = arith.addf %98, %99 : vector<16x128xf32>
    %cst_53 = arith.constant 0.000000e+00 : f32
    %101 = vector.broadcast %cst_53 : f32 to vector<16x128xf32>
    %102 = arith.maximumf %100, %101 : vector<16x128xf32>
    %c1_54 = arith.constant 1 : index
    %c0_55 = arith.constant 0 : index
    %c0_56 = arith.constant 0 : index
    %103 = vector.load %arg13[%c1_54, %c0_55, %c0_56] : memref<5x128x128xbf16, #tpu.memory_space<vmem>>, vector<1x128x128xbf16>
    %104 = vector.shape_cast %103 : vector<1x128x128xbf16> to vector<128x128xbf16>
    %c1_57 = arith.constant 1 : index
    %c0_58 = arith.constant 0 : index
    %c0_59 = arith.constant 0 : index
    %105 = vector.load %arg14[%c1_57, %c0_58, %c0_59] : memref<5x1x128xf32, #tpu.memory_space<vmem>>, vector<1x1x128xf32>
    %106 = vector.shape_cast %105 : vector<1x1x128xf32> to vector<1x128xf32>
    %107 = arith.truncf %102 : vector<16x128xf32> to vector<16x128xbf16>
    %cst_60 = arith.constant dense<0.000000e+00> : vector<16x128xf32>
    %108 = tpu.matmul %107, %104, %cst_60 {dimension_numbers = #tpu.dot_dimension_numbers<[1], [0], [0], [1], [0, 0, 1, 1], [], []>} : vector<16x128xbf16>, vector<128x128xbf16>, vector<16x128xf32> -> vector<16x128xf32>
    %109 = vector.broadcast %106 : vector<1x128xf32> to vector<16x128xf32>
    %110 = arith.addf %108, %109 : vector<16x128xf32>
    %111 = arith.addf %90, %110 : vector<16x128xf32>
    %112 = vector.extract_strided_slice %65 {offsets = [0, 256], sizes = [16, 128], strides = [1, 1]} : vector<16x640xf32> to vector<16x128xf32>
    %113 = arith.addf %111, %112 : vector<16x128xf32>
    %cst_61 = arith.constant 0.000000e+00 : f32
    %114 = vector.broadcast %cst_61 : f32 to vector<16x128xf32>
    %115 = arith.maximumf %113, %114 : vector<16x128xf32>
    %c2 = arith.constant 2 : index
    %c0_62 = arith.constant 0 : index
    %c0_63 = arith.constant 0 : index
    %116 = vector.load %arg11[%c2, %c0_62, %c0_63] : memref<5x128x128xbf16, #tpu.memory_space<vmem>>, vector<1x128x128xbf16>
    %117 = vector.shape_cast %116 : vector<1x128x128xbf16> to vector<128x128xbf16>
    %c2_64 = arith.constant 2 : index
    %c0_65 = arith.constant 0 : index
    %c0_66 = arith.constant 0 : index
    %118 = vector.load %arg12[%c2_64, %c0_65, %c0_66] : memref<5x1x128xf32, #tpu.memory_space<vmem>>, vector<1x1x128xf32>
    %119 = vector.shape_cast %118 : vector<1x1x128xf32> to vector<1x128xf32>
    %120 = arith.truncf %115 : vector<16x128xf32> to vector<16x128xbf16>
    %cst_67 = arith.constant dense<0.000000e+00> : vector<16x128xf32>
    %121 = tpu.matmul %120, %117, %cst_67 {dimension_numbers = #tpu.dot_dimension_numbers<[1], [0], [0], [1], [0, 0, 1, 1], [], []>} : vector<16x128xbf16>, vector<128x128xbf16>, vector<16x128xf32> -> vector<16x128xf32>
    %122 = vector.broadcast %119 : vector<1x128xf32> to vector<16x128xf32>
    %123 = arith.addf %121, %122 : vector<16x128xf32>
    %cst_68 = arith.constant 0.000000e+00 : f32
    %124 = vector.broadcast %cst_68 : f32 to vector<16x128xf32>
    %125 = arith.maximumf %123, %124 : vector<16x128xf32>
    %c2_69 = arith.constant 2 : index
    %c0_70 = arith.constant 0 : index
    %c0_71 = arith.constant 0 : index
    %126 = vector.load %arg13[%c2_69, %c0_70, %c0_71] : memref<5x128x128xbf16, #tpu.memory_space<vmem>>, vector<1x128x128xbf16>
    %127 = vector.shape_cast %126 : vector<1x128x128xbf16> to vector<128x128xbf16>
    %c2_72 = arith.constant 2 : index
    %c0_73 = arith.constant 0 : index
    %c0_74 = arith.constant 0 : index
    %128 = vector.load %arg14[%c2_72, %c0_73, %c0_74] : memref<5x1x128xf32, #tpu.memory_space<vmem>>, vector<1x1x128xf32>
    %129 = vector.shape_cast %128 : vector<1x1x128xf32> to vector<1x128xf32>
    %130 = arith.truncf %125 : vector<16x128xf32> to vector<16x128xbf16>
    %cst_75 = arith.constant dense<0.000000e+00> : vector<16x128xf32>
    %131 = tpu.matmul %130, %127, %cst_75 {dimension_numbers = #tpu.dot_dimension_numbers<[1], [0], [0], [1], [0, 0, 1, 1], [], []>} : vector<16x128xbf16>, vector<128x128xbf16>, vector<16x128xf32> -> vector<16x128xf32>
    %132 = vector.broadcast %129 : vector<1x128xf32> to vector<16x128xf32>
    %133 = arith.addf %131, %132 : vector<16x128xf32>
    %134 = arith.addf %113, %133 : vector<16x128xf32>
    %135 = vector.extract_strided_slice %65 {offsets = [0, 384], sizes = [16, 128], strides = [1, 1]} : vector<16x640xf32> to vector<16x128xf32>
    %136 = arith.addf %134, %135 : vector<16x128xf32>
    %cst_76 = arith.constant 0.000000e+00 : f32
    %137 = vector.broadcast %cst_76 : f32 to vector<16x128xf32>
    %138 = arith.maximumf %136, %137 : vector<16x128xf32>
    %c3 = arith.constant 3 : index
    %c0_77 = arith.constant 0 : index
    %c0_78 = arith.constant 0 : index
    %139 = vector.load %arg11[%c3, %c0_77, %c0_78] : memref<5x128x128xbf16, #tpu.memory_space<vmem>>, vector<1x128x128xbf16>
    %140 = vector.shape_cast %139 : vector<1x128x128xbf16> to vector<128x128xbf16>
    %c3_79 = arith.constant 3 : index
    %c0_80 = arith.constant 0 : index
    %c0_81 = arith.constant 0 : index
    %141 = vector.load %arg12[%c3_79, %c0_80, %c0_81] : memref<5x1x128xf32, #tpu.memory_space<vmem>>, vector<1x1x128xf32>
    %142 = vector.shape_cast %141 : vector<1x1x128xf32> to vector<1x128xf32>
    %143 = arith.truncf %138 : vector<16x128xf32> to vector<16x128xbf16>
    %cst_82 = arith.constant dense<0.000000e+00> : vector<16x128xf32>
    %144 = tpu.matmul %143, %140, %cst_82 {dimension_numbers = #tpu.dot_dimension_numbers<[1], [0], [0], [1], [0, 0, 1, 1], [], []>} : vector<16x128xbf16>, vector<128x128xbf16>, vector<16x128xf32> -> vector<16x128xf32>
    %145 = vector.broadcast %142 : vector<1x128xf32> to vector<16x128xf32>
    %146 = arith.addf %144, %145 : vector<16x128xf32>
    %cst_83 = arith.constant 0.000000e+00 : f32
    %147 = vector.broadcast %cst_83 : f32 to vector<16x128xf32>
    %148 = arith.maximumf %146, %147 : vector<16x128xf32>
    %c3_84 = arith.constant 3 : index
    %c0_85 = arith.constant 0 : index
    %c0_86 = arith.constant 0 : index
    %149 = vector.load %arg13[%c3_84, %c0_85, %c0_86] : memref<5x128x128xbf16, #tpu.memory_space<vmem>>, vector<1x128x128xbf16>
    %150 = vector.shape_cast %149 : vector<1x128x128xbf16> to vector<128x128xbf16>
    %c3_87 = arith.constant 3 : index
    %c0_88 = arith.constant 0 : index
    %c0_89 = arith.constant 0 : index
    %151 = vector.load %arg14[%c3_87, %c0_88, %c0_89] : memref<5x1x128xf32, #tpu.memory_space<vmem>>, vector<1x1x128xf32>
    %152 = vector.shape_cast %151 : vector<1x1x128xf32> to vector<1x128xf32>
    %153 = arith.truncf %148 : vector<16x128xf32> to vector<16x128xbf16>
    %cst_90 = arith.constant dense<0.000000e+00> : vector<16x128xf32>
    %154 = tpu.matmul %153, %150, %cst_90 {dimension_numbers = #tpu.dot_dimension_numbers<[1], [0], [0], [1], [0, 0, 1, 1], [], []>} : vector<16x128xbf16>, vector<128x128xbf16>, vector<16x128xf32> -> vector<16x128xf32>
    %155 = vector.broadcast %152 : vector<1x128xf32> to vector<16x128xf32>
    %156 = arith.addf %154, %155 : vector<16x128xf32>
    %157 = arith.addf %136, %156 : vector<16x128xf32>
    %158 = vector.extract_strided_slice %65 {offsets = [0, 512], sizes = [16, 128], strides = [1, 1]} : vector<16x640xf32> to vector<16x128xf32>
    %159 = arith.addf %157, %158 : vector<16x128xf32>
    %cst_91 = arith.constant 0.000000e+00 : f32
    %160 = vector.broadcast %cst_91 : f32 to vector<16x128xf32>
    %161 = arith.maximumf %159, %160 : vector<16x128xf32>
    %c4 = arith.constant 4 : index
    %c0_92 = arith.constant 0 : index
    %c0_93 = arith.constant 0 : index
    %162 = vector.load %arg11[%c4, %c0_92, %c0_93] : memref<5x128x128xbf16, #tpu.memory_space<vmem>>, vector<1x128x128xbf16>
    %163 = vector.shape_cast %162 : vector<1x128x128xbf16> to vector<128x128xbf16>
    %c4_94 = arith.constant 4 : index
    %c0_95 = arith.constant 0 : index
    %c0_96 = arith.constant 0 : index
    %164 = vector.load %arg12[%c4_94, %c0_95, %c0_96] : memref<5x1x128xf32, #tpu.memory_space<vmem>>, vector<1x1x128xf32>
    %165 = vector.shape_cast %164 : vector<1x1x128xf32> to vector<1x128xf32>
    %166 = arith.truncf %161 : vector<16x128xf32> to vector<16x128xbf16>
    %cst_97 = arith.constant dense<0.000000e+00> : vector<16x128xf32>
    %167 = tpu.matmul %166, %163, %cst_97 {dimension_numbers = #tpu.dot_dimension_numbers<[1], [0], [0], [1], [0, 0, 1, 1], [], []>} : vector<16x128xbf16>, vector<128x128xbf16>, vector<16x128xf32> -> vector<16x128xf32>
    %168 = vector.broadcast %165 : vector<1x128xf32> to vector<16x128xf32>
    %169 = arith.addf %167, %168 : vector<16x128xf32>
    %cst_98 = arith.constant 0.000000e+00 : f32
    %170 = vector.broadcast %cst_98 : f32 to vector<16x128xf32>
    %171 = arith.maximumf %169, %170 : vector<16x128xf32>
    %c4_99 = arith.constant 4 : index
    %c0_100 = arith.constant 0 : index
    %c0_101 = arith.constant 0 : index
    %172 = vector.load %arg13[%c4_99, %c0_100, %c0_101] : memref<5x128x128xbf16, #tpu.memory_space<vmem>>, vector<1x128x128xbf16>
    %173 = vector.shape_cast %172 : vector<1x128x128xbf16> to vector<128x128xbf16>
    %c4_102 = arith.constant 4 : index
    %c0_103 = arith.constant 0 : index
    %c0_104 = arith.constant 0 : index
    %174 = vector.load %arg14[%c4_102, %c0_103, %c0_104] : memref<5x1x128xf32, #tpu.memory_space<vmem>>, vector<1x1x128xf32>
    %175 = vector.shape_cast %174 : vector<1x1x128xf32> to vector<1x128xf32>
    %176 = arith.truncf %171 : vector<16x128xf32> to vector<16x128xbf16>
    %cst_105 = arith.constant dense<0.000000e+00> : vector<16x128xf32>
    %177 = tpu.matmul %176, %173, %cst_105 {dimension_numbers = #tpu.dot_dimension_numbers<[1], [0], [0], [1], [0, 0, 1, 1], [], []>} : vector<16x128xbf16>, vector<128x128xbf16>, vector<16x128xf32> -> vector<16x128xf32>
    %178 = vector.broadcast %175 : vector<1x128xf32> to vector<16x128xf32>
    %179 = arith.addf %177, %178 : vector<16x128xf32>
    %180 = arith.addf %159, %179 : vector<16x128xf32>
    %cst_106 = arith.constant 0.000000e+00 : f32
    %181 = vector.broadcast %cst_106 : f32 to vector<16x128xf32>
    %182 = arith.maximumf %180, %181 : vector<16x128xf32>
    %c0_107 = arith.constant 0 : index
    %c0_108 = arith.constant 0 : index
    %183 = vector.load %arg15[%c0_107, %c0_108] : memref<128x128xbf16, #tpu.memory_space<vmem>>, vector<128x128xbf16>
    %c0_109 = arith.constant 0 : index
    %c0_110 = arith.constant 0 : index
    %184 = vector.load %arg16[%c0_109, %c0_110] : memref<1x128xf32, #tpu.memory_space<vmem>>, vector<1x128xf32>
    %185 = arith.truncf %182 : vector<16x128xf32> to vector<16x128xbf16>
    %cst_111 = arith.constant dense<0.000000e+00> : vector<16x128xf32>
    %186 = tpu.matmul %185, %183, %cst_111 {dimension_numbers = #tpu.dot_dimension_numbers<[1], [0], [0], [1], [0, 0, 1, 1], [], []>} : vector<16x128xbf16>, vector<128x128xbf16>, vector<16x128xf32> -> vector<16x128xf32>
    %187 = vector.broadcast %184 : vector<1x128xf32> to vector<16x128xf32>
    %188 = arith.addf %186, %187 : vector<16x128xf32>
    %c0_112 = arith.constant 0 : index
    %c0_113 = arith.constant 0 : index
    %c0_114 = arith.constant 0 : index
    %189 = vector.load %arg17[%c0_112, %c0_113, %c0_114] : memref<1x16x128xf32, #tpu.memory_space<vmem>>, vector<1x16x128xf32>
    %190 = vector.shape_cast %189 : vector<1x16x128xf32> to vector<16x128xf32>
    %191 = vector.shape_cast %188 : vector<16x128xf32> to vector<1x16x128xf32>
    tpu.vector_store %arg17[%c0_112, %c0_113, %c0_114], %191 {strides = array<i32>} : memref<1x16x128xf32, #tpu.memory_space<vmem>>, vector<1x16x128xf32>,
    return
  }
  func.func @transform_0(%arg0: i32, %arg1: i32) -> (i32, i32, i32) {
    %c0_i32 = arith.constant 0 : i32
    %c0_i32_0 = arith.constant 0 : i32
    return %arg0, %arg1, %c0_i32 : i32, i32, i32
  }
  func.func @transform_1(%arg0: i32, %arg1: i32) -> (i32, i32, i32) {
    %c0_i32 = arith.constant 0 : i32
    %c0_i32_0 = arith.constant 0 : i32
    %c0_i32_1 = arith.constant 0 : i32
    return %arg0, %c0_i32, %c0_i32_0 : i32, i32, i32
  }
  func.func @transform_2(%arg0: i32, %arg1: i32) -> (i32, i32, i32) {
    %c0_i32 = arith.constant 0 : i32
    %c0_i32_0 = arith.constant 0 : i32
    %c0_i32_1 = arith.constant 0 : i32
    return %arg0, %c0_i32, %c0_i32_0 : i32, i32, i32
  }
  func.func @transform_3(%arg0: i32, %arg1: i32) -> (i32, i32) {
    %c0_i32 = arith.constant 0 : i32
    %c0_i32_0 = arith.constant 0 : i32
    %c0_i32_1 = arith.constant 0 : i32
    return %c0_i32, %c0_i32_0 : i32, i32
  }
  func.func @transform_4(%arg0: i32, %arg1: i32) -> (i32, i32) {
    %c0_i32 = arith.constant 0 : i32
    %c0_i32_0 = arith.constant 0 : i32
    %c0_i32_1 = arith.constant 0 : i32
    return %c0_i32, %c0_i32_0 : i32, i32
  }
  func.func @transform_5(%arg0: i32, %arg1: i32) -> (i32, i32) {
    %c0_i32 = arith.constant 0 : i32
    %c0_i32_0 = arith.constant 0 : i32
    %c0_i32_1 = arith.constant 0 : i32
    return %c0_i32, %c0_i32_0 : i32, i32
  }
  func.func @transform_6(%arg0: i32, %arg1: i32) -> (i32, i32) {
    %c0_i32 = arith.constant 0 : i32
    %c0_i32_0 = arith.constant 0 : i32
    %c0_i32_1 = arith.constant 0 : i32
    return %c0_i32, %c0_i32_0 : i32, i32
  }
  func.func @transform_7(%arg0: i32, %arg1: i32) -> (i32, i32) {
    %c0_i32 = arith.constant 0 : i32
    %c0_i32_0 = arith.constant 0 : i32
    %c0_i32_1 = arith.constant 0 : i32
    return %c0_i32, %c0_i32_0 : i32, i32
  }
  func.func @transform_8(%arg0: i32, %arg1: i32) -> (i32, i32) {
    %c0_i32 = arith.constant 0 : i32
    %c0_i32_0 = arith.constant 0 : i32
    %c0_i32_1 = arith.constant 0 : i32
    return %c0_i32, %c0_i32_0 : i32, i32
  }
  func.func @transform_9(%arg0: i32, %arg1: i32) -> (i32, i32, i32) {
    %c0_i32 = arith.constant 0 : i32
    %c0_i32_0 = arith.constant 0 : i32
    %c0_i32_1 = arith.constant 0 : i32
    %c0_i32_2 = arith.constant 0 : i32
    return %c0_i32, %c0_i32_0, %c0_i32_1 : i32, i32, i32
  }
  func.func @transform_10(%arg0: i32, %arg1: i32) -> (i32, i32, i32) {
    %c0_i32 = arith.constant 0 : i32
    %c0_i32_0 = arith.constant 0 : i32
    %c0_i32_1 = arith.constant 0 : i32
    %c0_i32_2 = arith.constant 0 : i32
    return %c0_i32, %c0_i32_0, %c0_i32_1 : i32, i32, i32
  }
  func.func @transform_11(%arg0: i32, %arg1: i32) -> (i32, i32, i32) {
    %c0_i32 = arith.constant 0 : i32
    %c0_i32_0 = arith.constant 0 : i32
    %c0_i32_1 = arith.constant 0 : i32
    %c0_i32_2 = arith.constant 0 : i32
    return %c0_i32, %c0_i32_0, %c0_i32_1 : i32, i32, i32
  }
  func.func @transform_12(%arg0: i32, %arg1: i32) -> (i32, i32, i32) {
    %c0_i32 = arith.constant 0 : i32
    %c0_i32_0 = arith.constant 0 : i32
    %c0_i32_1 = arith.constant 0 : i32
    %c0_i32_2 = arith.constant 0 : i32
    return %c0_i32, %c0_i32_0, %c0_i32_1 : i32, i32, i32
  }
  func.func @transform_13(%arg0: i32, %arg1: i32) -> (i32, i32) {
    %c0_i32 = arith.constant 0 : i32
    %c0_i32_0 = arith.constant 0 : i32
    %c0_i32_1 = arith.constant 0 : i32
    return %c0_i32, %c0_i32_0 : i32, i32
  }
  func.func @transform_14(%arg0: i32, %arg1: i32) -> (i32, i32) {
    %c0_i32 = arith.constant 0 : i32
    %c0_i32_0 = arith.constant 0 : i32
    %c0_i32_1 = arith.constant 0 : i32
    return %c0_i32, %c0_i32_0 : i32, i32
  }
  func.func @transform_15(%arg0: i32, %arg1: i32) -> (i32, i32, i32) {
    %c0_i32 = arith.constant 0 : i32
    %c0_i32_0 = arith.constant 0 : i32
    return %arg0, %arg1, %c0_i32 : i32, i32, i32
  }
}

</mosaic_0001>

<bundles_post_ra>
// kernel: tpu_custom_call.1
= control target key start
LH: loop header
LB: loop body
LE: loop exit
PB: predicated region body
PF: predicated region fallthrough
CT: control target
= control target key end

     0   :  { %s5049_s0 = inlined_call_operand.vmem [shape: f32[2,16,3], index: 0, kind: input, shape index: {}]   ;;  %s5050_s1 = inlined_call_operand.vmem [shape: f32[2,3,8], index: 1, kind: input, shape index: {}]   ;;  %s5051_s2 = inlined_call_operand.hbm [shape: f32[2,8,128], index: 2, kind: input, shape index: {}]   ;;  %s5052_s3 = inlined_call_operand.hbm [shape: bf16[128,128], index: 3, kind: input, shape index: {}]   ;;  %s5053_s4 = inlined_call_operand.hbm [shape: f32[1,128], index: 4, kind: input, shape index: {}]   ;;  %s5054_s5 = inlined_call_operand.vmem [shape: bf16[128,128], index: 5, kind: input, shape index: {}]   ;;  %s5055_s6 = inlined_call_operand.hbm [shape: f32[1,128], index: 6, kind: input, shape index: {}]   ;;  %s5056_s7 = inlined_call_operand.hbm [shape: bf16[128,640], index: 7, kind: input, shape index: {}]   ;;  %s5057_s8 = inlined_call_operand.vmem [shape: f32[1,640], index: 8, kind: input, shape index: {}]   ;;  %s5058_s9 = inlined_call_operand.hbm [shape: bf16[5,128,128], index: 9, kind: input, shape index: {}]   ;;  %s5059_s10 = inlined_call_operand.vmem [shape: f32[5,1,128], index: 10, kind: input, shape index: {}]   ;;  %s5060_s11 = inlined_call_operand.hbm [shape: bf16[5,128,128], index: 11, kind: input, shape index: {}]   ;;  %s5061_s12 = inlined_call_operand.vmem [shape: f32[5,1,128], index: 12, kind: input, shape index: {}]   ;;  %s5062_s13 = inlined_call_operand.hbm [shape: bf16[128,128], index: 13, kind: input, shape index: {}]   ;;  %s5063_s14 = inlined_call_operand.vmem [shape: f32[1,128], index: 14, kind: input, shape index: {}]   ;;  %s5064_s15 = inlined_call_operand.hbm [shape: f32[2,16,128], index: 15, kind: output, shape index: {}]  }
   0x1   :  { %5079 = sst [smem:[#allocation24_spill]] %s5049_s0 }
   0x2   :  { %5080 = sst [smem:[#allocation25_spill]] %s5050_s1 }
   0x3   :  { %5081 = sst [smem:[#allocation26_spill]] %s5052_s3 }
   0x4   :  { %5082 = sst [smem:[#allocation27_spill]] %s5053_s4 }
   0x5   :  { %5083 = sst [smem:[#allocation28_spill]] %s5054_s5 }
   0x6   :  { %5084 = sst [smem:[#allocation29_spill]] %s5057_s8 }
   0x7   :  { %5085 = sst [smem:[#allocation30_spill]] %s5059_s10 }
   0x8   :  { %5086 = sst [smem:[#allocation31_spill]] %s5061_s12 }
   0x9   :  { %5087 = sst [smem:[#allocation32_spill]] %s5063_s14 }
   0xa   :  { %5088 = sst [smem:[#allocation33_spill]] %s5064_s15 }
   0xb   :  { %20 = vsyncpa [#allocation3], 0 }
   0xc   :  { %22 = vsyncpa [#allocation3 + $0x1], 0 }
   0xd   :  { %23 = vsyncpa [#allocation6], 0 }
   0xe   :  { %24 = vsyncpa [#allocation9], 0 }
   0xf   :  { %25 = vsyncpa [#allocation12], 0 }
  0x10   :  { %26 = vsyncpa [#allocation15], 0 }
  0x11   :  { %27 = vsyncpa [#allocation4], 0 }
  0x12   :  { %29 = vsyncpa [#allocation4 + $0x1], 0  ;;  %s4374_s18 = smov 0   ;;  %s4376_s19 = smov 0  }
  0x13   :  { %s4378_s20 = smov 0   ;;  %s4380_s21 = smov 0  }
  0x14   :  { %s4382_s22 = smov 0   ;;  %s4384_s23 = smov 0  }
  0x15 LB: > { %5089 = sst [smem:[#allocation23_spill]] %s4264_s21  ;;  %s5065_s24 = sadd.s32 4294967295, %s4272_s23   ;;  %s4272_s23 = sphi %s4384_s23, %s35_s23   ;;  %s4268_s22 = sphi %s4382_s22, %s5123_s22   ;;  %s4264_s21 = sphi %s4380_s21, %s5122_s21   ;;  %s4260_s20 = sphi %s4378_s20, %s5121_s20   ;;  %s4256_s19 = sphi %s4376_s19, %s5120_s19   ;;  %s4252_s18 = sphi %s4374_s18, %s5119_s18  }
  0x16   : > { %p3004_p0 = scmp.ge.s32.totalorder %s4272_s23, 1  ;;  %p4408_p1 = scmp.eq.s32.totalorder %s5065_s24, 0 }
  0x17   : > { %p412_p2 = scmp.lt.s32.totalorder %s4272_s23, 3  ;;  %s4274_s27 = smov [#allocation5]  }
  0x18   : > { %s5090_s25 = scalar_select %p4408_p1, 1, 0 }
  0x19   : > { %p4413_p3 = pnand %p3004_p0, %p412_p2  ;;  %s424_s28 = sshll.u32 %s4274_s27, 4  ;;  %s4417_s28 = int_to_ptr.vmem [resolvable:$true] %s424_s28 }
  0x1a   : > { %s4275_s30 = smov [#allocation8]   ;;  %s4276_s17 = smov [#allocation11]  }
  0x1b   : > { %s5091_s26 = scalar_select %p4413_p3, 1, 0 }
  0x1c   : > { %p3658_p4 = pneg %p4413_p3  ;;  %s452_s16 = sshll.u32 %s4275_s30, 4  ;;  %s4428_s16 = int_to_ptr.vmem [resolvable:$true] %s452_s16 }
  0x1d   : > { %s4430_s24 = sshll.u32 %s4276_s17, 4  ;;  %s5093_s3 = sld [smem:[#allocation26_spill]]  ;;  %s479_s24 = int_to_ptr.vmem [resolvable:$true] %s4430_s24 }
  0x1e   : > { %p4424_p6 = pnand %p3658_p4, %p4408_p1 }
  0x20   : > { %p4440_p8 = pneg %p4424_p6 }
  0x23   : > { %s3948_s14 = scalar_lea.hbm %s5093_s3, 1024 }
  0x24   : > { %p3949_p7 = scmp.ne.s32.totalorder %s5093_s3, %s3948_s14  ;;  %p3955_p11 = scmp.lt.u32.totalorder %s3948_s14, %s5093_s3 }
  0x26   : > { %p3951_p9 = pnand %p4440_p8, %p3949_p7 }
  0x28   : > { %p3952_p10 = pneg %p3951_p9 }
  0x2a   : > { %p3957_p12 = pnand %p3955_p11, %p3952_p10 }
  0x2c   : > { %3960 = shalt.err (!%p3957_p12)
}
  0x2d   : > { %s3961_s10 = scalar_lea.vmem %s4417_s28, 1024  ;;  %p3969_p4 = scmp.lt.s32.totalorder %s4417_s28, %s4417_s28 }
  0x2e   : > { %p3962_p13 = scmp.ne.s32.totalorder %s4417_s28, %s3961_s10  ;;  %p3970_p5 = scmp.lt.s32.totalorder %s3961_s10, %s3961_s10 }
  0x30   : > { %p3964_p0 = pnand %p3962_p13, %p4440_p8  ;;  %p3971_p7 = por %p3970_p5, %p3969_p4 }
  0x32   : > { %p3965_p2 = pneg %p3964_p0 }
  0x34   : > { %p3972_p9 = pnand %p3971_p7, %p3965_p2 }
  0x36   : > { %3975 = shalt.err (!%p3972_p9)
}
  0x37   : > { %s5074_s12 = smov 64   ;;  %s5076_s14 = smov 4  }
  0x38   : > { %3661 = dma.hbm_to_vmem [thread:$0]  (!%p4424_p6), %s5093_s3, 1024, %s4417_s28, [#allocation6], %s5074_s12, %s5074_s12, %s5076_s14  }
  0x39   : > { %s3976_s10 = scalar_lea.hbm %s5055_s6, 16 }
  0x3a   : > { %p3977_p5 = scmp.ne.s32.totalorder %s5055_s6, %s3976_s10  ;;  %p3983_p12 = scmp.lt.u32.totalorder %s3976_s10, %s5055_s6 }
  0x3c   : > { %p3979_p10 = pnand %p3977_p5, %p4440_p8 }
  0x3e   : > { %p3980_p11 = pneg %p3979_p10 }
  0x40   : > { %p3985_p13 = pnand %p3983_p12, %p3980_p11 }
  0x42   : > { %3988 = shalt.err (!%p3985_p13)
}
  0x43   : > { %s3989_s28 = scalar_lea.vmem %s4428_s16, 16  ;;  %s3996_s1 = scalar_lea.vmem %s4428_s16, 32 }
  0x44   : > { %p3990_p0 = scmp.ne.s32.totalorder %s4428_s16, %s3989_s28  ;;  %p3997_p7 = scmp.lt.s32.totalorder %s4428_s16, %s4428_s16 }
  0x45   : > { %p3998_p9 = scmp.lt.s32.totalorder %s3996_s1, %s3989_s28 }
  0x46   : > { %p3992_p2 = pnand %p3990_p0, %p4440_p8 }
  0x47   : > { %p3999_p5 = por %p3998_p9, %p3997_p7 }
  0x48   : > { %p3993_p4 = pneg %p3992_p2 }
  0x4a   : > { %p4000_p10 = pnand %p3999_p5, %p3993_p4 }
  0x4c   : > { %4003 = shalt.err (!%p4000_p10)
}
  0x4d   : > { %3667 = dma.hbm_to_vmem [thread:$0]  (!%p4424_p6), %s5055_s6, 16, %s4428_s16, [#allocation9]  }
  0x4e   : > { %s4004_s27 = scalar_lea.hbm %s5058_s9, 5120 }
  0x4f   : > { %p4005_p11 = scmp.ne.s32.totalorder %s5058_s9, %s4004_s27  ;;  %p4011_p0 = scmp.lt.u32.totalorder %s4004_s27, %s5058_s9 }
  0x51   : > { %p4007_p12 = pnand %p4005_p11, %p4440_p8 }
  0x53   : > { %p4008_p13 = pneg %p4007_p12 }
  0x55   : > { %p4013_p2 = pnand %p4011_p0, %p4008_p13 }
  0x57   : > { %4016 = shalt.err (!%p4013_p2)
}
  0x58   : > { %s4017_s1 = scalar_lea.vmem %s479_s24, 5120  ;;  %p4025_p5 = scmp.lt.s32.totalorder %s479_s24, %s479_s24 }
  0x59   : > { %p4018_p4 = scmp.ne.s32.totalorder %s479_s24, %s4017_s1  ;;  %p4026_p10 = scmp.lt.s32.totalorder %s4017_s1, %s4017_s1 }
  0x5b   : > { %p4020_p7 = pnand %p4018_p4, %p4440_p8  ;;  %p4027_p3 = por %p4026_p10, %p4025_p5 }
  0x5d   : > { %p4021_p9 = pneg %p4020_p7 }
  0x5f   : > { %p4028_p1 = pnand %p4027_p3, %p4021_p9 }
  0x61   : > { %4031 = shalt.err (!%p4028_p1)
}
  0x62   : > { %3673 = dma.hbm_to_vmem [thread:$0]  (!%p4424_p6), %s5058_s9, 5120, %s479_s24, [#allocation12], %s5074_s12, %s5074_s12, %s5076_s14  }
  0x63   : > { %s4279_s5 = smov [#allocation7]   ;;  %s4280_s15 = smov [#allocation10]  }
  0x64   : > { %s438_s21 = sshll.u32 %s4279_s5, 4  ;;  %s462_s27 = sshll.u32 %s4280_s15, 4  ;;  %s439_s21 = int_to_ptr.vmem [resolvable:$true] %s438_s21  ;;  %s463_s27 = int_to_ptr.vmem [resolvable:$true] %s462_s27 }
  0x65   : > { %s5095_s4 = sld [smem:[#allocation27_spill]] }
  0x6b   : > { %s4032_s10 = scalar_lea.hbm %s5095_s4, 16 }
  0x6c   : > { %p4033_p1 = scmp.ne.s32.totalorder %s5095_s4, %s4032_s10  ;;  %p4039_p12 = scmp.lt.u32.totalorder %s4032_s10, %s5095_s4 }
  0x6e   : > { %p4035_p3 = pnand %p4033_p1, %p4440_p8 }
  0x70   : > { %p4036_p11 = pneg %p4035_p3 }
  0x72   : > { %p4041_p13 = pnand %p4039_p12, %p4036_p11 }
  0x74   : > { %4044 = shalt.err (!%p4041_p13)
}
  0x75   : > { %s4045_s24 = scalar_lea.vmem %s439_s21, 16  ;;  %s4052_s0 = scalar_lea.vmem %s439_s21, 32 }
  0x76   : > { %p4046_p0 = scmp.ne.s32.totalorder %s439_s21, %s4045_s24  ;;  %p4053_p7 = scmp.lt.s32.totalorder %s439_s21, %s439_s21 }
  0x77   : > { %p4054_p9 = scmp.lt.s32.totalorder %s4052_s0, %s4045_s24 }
  0x78   : > { %p4048_p2 = pnand %p4046_p0, %p4440_p8 }
  0x79   : > { %p4055_p5 = por %p4054_p9, %p4053_p7 }
  0x7a   : > { %p4049_p4 = pneg %p4048_p2 }
  0x7c   : > { %p4056_p10 = pnand %p4055_p5, %p4049_p4 }
  0x7e   : > { %4059 = shalt.err (!%p4056_p10)
}
  0x7f   : > { %3664 = dma.hbm_to_vmem [thread:$0]  (!%p4424_p6), %s5095_s4, 16, %s439_s21, [#allocation6]  }
  0x80   : > { %s4060_s17 = scalar_lea.hbm %s5056_s7, 5120 }
  0x81   : > { %p4061_p1 = scmp.ne.s32.totalorder %s5056_s7, %s4060_s17  ;;  %p4067_p12 = scmp.lt.u32.totalorder %s4060_s17, %s5056_s7 }
  0x83   : > { %p4063_p3 = pnand %p4061_p1, %p4440_p8 }
  0x85   : > { %p4064_p11 = pneg %p4063_p3 }
  0x87   : > { %p4069_p13 = pnand %p4067_p12, %p4064_p11 }
  0x89   : > { %4072 = shalt.err (!%p4069_p13)
}
  0x8a   : > { %s4073_s24 = scalar_lea.vmem %s463_s27, 5120  ;;  %p4081_p7 = scmp.lt.s32.totalorder %s463_s27, %s463_s27 }
  0x8b   : > { %p4074_p0 = scmp.ne.s32.totalorder %s463_s27, %s4073_s24  ;;  %p4082_p9 = scmp.lt.s32.totalorder %s4073_s24, %s4073_s24 }
  0x8d   : > { %p4076_p2 = pnand %p4074_p0, %p4440_p8  ;;  %p4083_p5 = por %p4082_p9, %p4081_p7 }
  0x8f   : > { %p4077_p4 = pneg %p4076_p2 }
  0x91   : > { %p4084_p10 = pnand %p4083_p5, %p4077_p4 }
  0x93   : > { %4087 = shalt.err (!%p4084_p10)
}
  0x94   : > { %s4281_s21 = smov 320   ;;  %s4282_s0 = smov 20  }
  0x95   : > { %3670 = dma.hbm_to_vmem [thread:$0]  (!%p4424_p6), %s5056_s7, 5120, %s463_s27, [#allocation9], %s4281_s21, %s4281_s21, %s4282_s0  }
  0x96   : > { %s4283_s3 = smov [#allocation13]   ;;  %s4284_s17 = smov [#allocation14]  }
  0x97   : > { %s494_s30 = sshll.u32 %s4283_s3, 4  ;;  %s510_s10 = sshll.u32 %s4284_s17, 4  ;;  %s495_s30 = int_to_ptr.vmem [resolvable:$true] %s494_s30  ;;  %s511_s10 = int_to_ptr.vmem [resolvable:$true] %s510_s10 }
  0x98   : > { %s4088_s16 = scalar_lea.hbm %s5060_s11, 5120 }
  0x99   : > { %p4089_p1 = scmp.ne.s32.totalorder %s5060_s11, %s4088_s16  ;;  %p4095_p12 = scmp.lt.u32.totalorder %s4088_s16, %s5060_s11 }
  0x9b   : > { %p4091_p3 = pnand %p4089_p1, %p4440_p8 }
  0x9d   : > { %p4092_p11 = pneg %p4091_p3 }
  0x9f   : > { %p4097_p13 = pnand %p4095_p12, %p4092_p11 }
  0xa1   : > { %4100 = shalt.err (!%p4097_p13)
}
  0xa2   : > { %s4101_s27 = scalar_lea.vmem %s495_s30, 5120  ;;  %p4109_p7 = scmp.lt.s32.totalorder %s495_s30, %s495_s30 }
  0xa3   : > { %p4102_p0 = scmp.ne.s32.totalorder %s495_s30, %s4101_s27  ;;  %p4110_p9 = scmp.lt.s32.totalorder %s4101_s27, %s4101_s27 }
  0xa5   : > { %p4104_p2 = pnand %p4102_p0, %p4440_p8  ;;  %p4111_p5 = por %p4110_p9, %p4109_p7 }
  0xa7   : > { %p4105_p4 = pneg %p4104_p2 }
  0xa9   : > { %p4112_p10 = pnand %p4111_p5, %p4105_p4 }
  0xab   : > { %4115 = shalt.err (!%p4112_p10)
}
  0xac   : > { %s5096_s12 = smov 4   ;;  %s5097_s21 = smov 64  }
  0xad   : > { %3676 = dma.hbm_to_vmem [thread:$0]  (!%p4424_p6), %s5060_s11, 5120, %s495_s30, [#allocation12], %s5097_s21, %s5097_s21, %s5096_s12  }
  0xae   : > { %s4116_s15 = scalar_lea.hbm %s5062_s13, 1024 }
  0xaf   : > { %p4117_p1 = scmp.ne.s32.totalorder %s5062_s13, %s4116_s15  ;;  %p4123_p12 = scmp.lt.u32.totalorder %s4116_s15, %s5062_s13 }
  0xb1   : > { %p4119_p3 = pnand %p4117_p1, %p4440_p8 }
  0xb3   : > { %p4120_p11 = pneg %p4119_p3 }
  0xb5   : > { %p4125_p13 = pnand %p4123_p12, %p4120_p11 }
  0xb7   : > { %4128 = shalt.err (!%p4125_p13)
}
  0xb8   : > { %s4129_s16 = scalar_lea.vmem %s511_s10, 1024  ;;  %p4137_p7 = scmp.lt.s32.totalorder %s511_s10, %s511_s10 }
  0xb9   : > { %p4130_p0 = scmp.ne.s32.totalorder %s511_s10, %s4129_s16  ;;  %p4138_p9 = scmp.lt.s32.totalorder %s4129_s16, %s4129_s16 }
  0xbb   : > { %p4132_p2 = pnand %p4130_p0, %p4440_p8  ;;  %p4139_p5 = por %p4138_p9, %p4137_p7 }
  0xbd   : > { %p4133_p4 = pneg %p4132_p2 }
  0xbf   : > { %p4140_p10 = pnand %p4139_p5, %p4133_p4 }
  0xc1   : > { %4143 = shalt.err (!%p4140_p10)
}
  0xc2   : > { %3679 = dma.hbm_to_vmem [thread:$0]  (!%p4424_p6), %s5062_s13, 1024, %s511_s10, [#allocation15], %s5097_s21, %s5097_s21, %s5096_s12  }
  0xc3   : > { %s3003_s8 = sadd.s32 4294967294, %s4272_s23   ;;  %s47_s29 = sadd.s32 1, %s4268_s22 }
  0xc4   : > { %s108_s27 = sadd.s32 1, %s4260_s20  ;;  %p49_p8 = scmp.ge.s32.totalorder %s47_s29, 2 }
  0xc5   : > { %p115_p1 = scmp.ne.s32.totalorder %s4260_s20, %s4256_s19  ;;  %p116_p3 = scmp.eq.s32.totalorder %s4272_s23, 0 }
  0xc6   : > { %p121_p11 = scmp.ne.s32.totalorder %s4256_s19, %s4252_s18  ;;  %s5125_s29 = smov (%p49_p8, %s47_s29), 0 }
  0xc7   : > { %p4598_p12 = por %p116_p3, %p115_p1  ;;  %p5099_p13 = scmp.ne.s32.totalorder %s5090_s25, 0 }
  0xc8   : > { %s105_s12 = ssub.s32 %s4268_s22, %s5125_s29  ;;  %s5101_s21 = sadd.s32 4294967295, %s4272_s23  }
  0xc9   : > { %p4604_p6 = por %p5099_p13, %p121_p11  ;;  %p399_p0 = scmp.eq.s32.totalorder %s5101_s21, 1 }
  0xca   : > { %p106_p2 = scmp.eq.s32.totalorder %s105_s12, 0  ;;  %p405_p4 = scmp.eq.s32.totalorder %s3003_s8, 1 }
  0xcb   : > { %p4612_p7 = por %p399_p0, %p115_p1  ;;  %p3695_p9 = scmp.lt.s32.totalorder %s4272_s23, 2 }
  0xcc   : > { %s4618_s0 = scalar_select %p106_p2, %s4260_s20, %s108_s27  }
  0xcd   : > { %s5102_s14 = scalar_select %p4612_p7, 1, 0 }
  0xce   : > { %p4620_p5 = por %p405_p4, %p121_p11  ;;  %s547_s15 = sand.u32 1, %s4260_s20  }
  0xcf   : > { %s3013_s3 = sshll.u32 %s547_s15, 3  ;;  %s3014_s17 = sshll.u32 %s4268_s22, 7 }
  0xd0   : > { %s5103_s5 = scalar_select %p4620_p5, 1, 0 }
  0xd1   : > { %s4629_s16 = scalar_lea.hbm %s5051_s2, %s3014_s17  ;;  %s551_s30 = scalar_lea.vmem [#allocation2], %s3013_s3 }
  0xd2   : > { %s558_s24 = sshll.u32 %s551_s30, 4  ;;  %p4635_p10 = pnand %p3695_p9, %p4598_p12  ;;  %s4631_s24 = int_to_ptr.vmem [resolvable:$true] %s558_s24 }
  0xd3   : > { %s548_s27 = scalar_lea.sflag [#allocation3], %s547_s15  ;;  %s4144_s12 = scalar_lea.hbm %s4629_s16, 128 }
  0xd4   : > { %p4145_p8 = scmp.ne.s32.totalorder %s4629_s16, %s4144_s12  ;;  %p4146_p1 = pneg %p4635_p10 }
  0xd5   : > { %s4149_s17 = scalar_lea.hbm %s5051_s2, 256  ;;  %p4150_p12 = scmp.lt.u32.totalorder %s4629_s16, %s5051_s2 }
  0xd6   : > { %p4147_p3 = pnand %p4146_p1, %p4145_p8  ;;  %p4151_p13 = scmp.lt.u32.totalorder %s4149_s17, %s4144_s12 }
  0xd7   : > { %p4153_p2 = scmp.lt.u32.totalorder %s4144_s12, %s4629_s16 }
  0xd8   : > { %p4148_p11 = pneg %p4147_p3  ;;  %p4152_p0 = por %p4151_p13, %p4150_p12 }
  0xda   : > { %p4154_p4 = por %p4153_p2, %p4152_p0 }
  0xdc   : > { %p4155_p9 = pnand %p4154_p4, %p4148_p11 }
  0xde   : > { %4158 = shalt.err (!%p4155_p9)
}
  0xdf   : > { %s4159_s15 = scalar_lea.vmem %s4631_s24, 128  ;;  %s4285_s1 = smov [#allocation2]  }
  0xe0   : > { %p4160_p8 = scmp.ne.s32.totalorder %s4631_s24, %s4159_s15  ;;  %s4164_s30 = sshll.u32 %s4285_s1, 4  ;;  %s4165_s30 = int_to_ptr.vmem [resolvable:$false] %s4164_s30 }
  0xe1   : > { %s4166_s21 = scalar_lea.vmem %s4165_s30, 256  ;;  %p4167_p7 = scmp.lt.s32.totalorder %s4631_s24, %s4165_s30 }
  0xe2   : > { %p4162_p3 = pnand %p4160_p8, %p4146_p1  ;;  %p4168_p12 = scmp.lt.s32.totalorder %s4166_s21, %s4159_s15 }
  0xe4   : > { %p4163_p5 = pneg %p4162_p3  ;;  %p4169_p13 = por %p4168_p12, %p4167_p7 }
  0xe6   : > { %p4170_p0 = pnand %p4169_p13, %p4163_p5 }
  0xe8   : > { %4173 = shalt.err (!%p4170_p0)
}
  0xe9   : > { %3683 = dma.hbm_to_vmem [thread:$0]  (!%p4635_p10), %s4629_s16, 128, %s4631_s24, %s548_s27  }
  0xea   : > { %p5105_p11 = scmp.ne.s32.totalorder %s5091_s26, 0 }
  0xeb   : > { %s4667_s12 = sand.u32 (!%p5105_p11), 1, %s4256_s19  }
  0xec   : > { %567 = sbr.rel (%p5105_p11) target bundleno = 3850 (0xf0a), region = 80  ;;  %s3016_s3 = sshll.u32 (!%p5105_p11), %s4667_s12, 3 }
  0xed   : > { %s570_s17 = scalar_lea.sflag (!%p5105_p11), [#allocation3], %s4667_s12  ;;  %s4671_s4 = scalar_lea.vmem (!%p5105_p11), [#allocation2], %s3016_s3 }
  0xf3   : > { %4227 = dma.done.wait (%p4604_p6), %s570_s17, 128  }
  0xf4   : > { %4229 = vsyncadd (%p4604_p6), %s570_s17, 4294967168  ;;  %p5106_p7 = scmp.ne.s32.totalorder %s5090_s25, 0 }
  0xf6   : > { %4231 = dma.done.wait (%p5106_p7), [#allocation6], 1040  }
  0xf7   : > { %4233 = vsyncadd (%p5106_p7), [#allocation6], 4294966256 }
  0xf8   : > { %4235 = dma.done.wait (%p5106_p7), [#allocation9], 5136  }
  0xf9   : > { %4237 = vsyncadd (%p5106_p7), [#allocation9], 4294962160 }
  0xfa   : > { %4239 = dma.done.wait (%p5106_p7), [#allocation12], 10240  }
  0xfb   : > { %4241 = vsyncadd (%p5106_p7), [#allocation12], 4294957056 }
  0xfc   : > { %4243 = dma.done.wait (%p5106_p7), [#allocation15], 1024  }
  0xfd   : > { %4245 = vsyncadd (%p5106_p7), [#allocation15], 4294966272  ;;  %s5107_s26 = sld [smem:[#allocation23_spill]]  ;;  %v4286_v0 = vmov 0   ;;  %s5108_s27 = sld [smem:[#allocation24_spill]]  ;;  %v4287_v3 = vmov 1   ;;  %v691_v5 = vlaneseq }
  0xfe   : > { %3772 = vset.pattern.permute.xlu1 %v4286_v0  ;;  %3770 = vset.pattern.permute.xlu0 %v4286_v0  ;;  %v4288_v4 = vmov 2   ;;  %s5109_s30 = sld [smem:[#allocation25_spill]]  ;;  %vm759_vm4 = vcmask 64512   ;;  %vm4290_vm5 = vmmov 0   ;;  %s5111_s8 = sld [smem:[#allocation29_spill]] }
  0xff   : > { %v4700_v6 = vshrl.u32 %v691_v5, 7  ;;  %v4289_v5 = vmov 0.0   ;;  %s3024_s24 = sshll.u32 %s4667_s12, 4  ;;  %p5116_p10 = scmp.ne.s32.totalorder %s5102_s14, 0 }
 0x100   : > { %3336 = vmatprep.subr.bf16.mxu1 %v4289_v5  ;;  %3352 = vmatprep.mubr.msk.bf16.mxu1 %vm4290_vm5, %v4289_v5  ;;  %s660_s15 = scalar_lea.vmem [#allocation16], %s3024_s24  ;;  %s2806_s24 = scalar_lea.sflag [#allocation4], %s4667_s12 }
 0x101   : > { %v711_v7 = vsub.s32 1, %v4700_v6  ;;  %v693_v8 = vsub.s32 0, %v4700_v6  ;;  %v729_v14 = vsub.s32 2, %v4700_v6  ;;  %s2821_s1 = sshll.u32 %s660_s15, 4  ;;  %s4995_s1 = int_to_ptr.vmem [resolvable:$true] %s2821_s1 }
 0x103   : > { %p662_p6 = scmp.lt.s32.totalorder %s5107_s26, 1 }
 0x105   : > { %s663_s10 = scalar_select %p662_p6, %s5107_s26, 1 }
 0x107   : > { %s3200_s16 = sshll.u32 %s663_s10, 4  ;;  %s3027_s25 = sshll.u32 %s663_s10, 2 }
 0x108   : > { %s669_s28 = scalar_lea.vmem %s5108_s27, %s3200_s16  ;;  %s674_s21 = scalar_lea.vmem %s5109_s30, %s3027_s25 }
 0x109   : > { %v678_v1 = vld [vmem:[%s669_s28 + $0x8] sm:$0xff]  ;;  %v677_v2 = vld [vmem:[%s669_s28] sm:$0xff]  ;;  %s5112_s25 = sld [smem:[#allocation30_spill]]  ;;  %s5113_s30 = sld [smem:[#allocation31_spill]] }
 0x10a   : > { %688 = vperm.xlu1 %3772, %v678_v1   ;;  %683 = vperm.xlu0 %3770, %v677_v2   ;;  %v679_v9 = vld [vmem:[%s674_s21] sm:$0x7]  ;;  %s5114_s28 = sld [smem:[#allocation32_spill]]  ;;  %s3201_s21 = sshll.u32 %s5107_s26, 8 }
 0x10b   : > { %v712_v12 = vrot.slane %v679_v9, %v711_v7  ;;  %v694_v13 = vrot.slane %v679_v9, %v693_v8  ;;  %v730_v21 = vrot.slane %v679_v9, %v729_v14  ;;  %v3777_v9 = vld [vmem:[#allocation5 + $0x8] sm:$0xff]   ;;  %s5115_s10 = sld [smem:[#allocation33_spill]]  ;;  %s4174_s26 = scalar_lea.vmem %s4995_s1, 256 }
 0x10c   : > { %p4175_p5 = scmp.ne.s32.totalorder %s4995_s1, %s4174_s26 }
 0x10e   : > { %3773 = vset.pattern.permute.xlu1 %v4287_v3  ;;  %3771 = vset.pattern.permute.xlu0 %v4287_v3  ;;  %v680_v3 = vld [vmem:[%s4671_s4] sm:$0xff]  ;;  %s5110_s4 = sld [smem:[#allocation28_spill]]  ;;  %p4176_p1 = pnand %p4175_p5, %p5116_p10 }
 0x10f   : > { %706 = vperm.xlu1 %3773, %v678_v1   ;;  %702 = vperm.xlu0 %3771, %v677_v2  }
 0x110   : > { %3331 = vmatprep.subr.mxu0 %v680_v3  ;;  %p4177_p2 = pneg %p4176_p1 }
 0x111   : > { %3332 = vmatpush3.msra.mxu0 %v680_v3  ;;  %v3821_v3 = vld [vmem:[#allocation10 + $0x30] ss:$20 sps:$4 sm:$0xff]   ;;  %s5000_s16 = scalar_lea.hbm %s5115_s10, %s3201_s21 }
 0x112   : > { %3356 = vmatprep.subr.bf16.mxu0 %v4289_v5 }
 0x113   : > { %3774 = vset.pattern.permute.xlu1 %v4288_v4  ;;  %3775 = vset.pattern.permute.xlu0 %v4288_v4  ;;  %v3776_v4 = vld [vmem:[#allocation5] sm:$0xff]  }
 0x114   : > { %720 = vperm.xlu1 %3774, %v677_v2   ;;  %724 = vperm.xlu0 %3775, %v678_v1  }
 0x115   : > { %3337 = vmatpush3.bf16.msra.mxu1 %v3776_v4  ;;  %v3827_v4 = vld [vmem:[#allocation10 + $0x5c] ss:$20 sps:$4 sm:$0xff]  }
 0x116   : > { %3338 = vmatprep.subr.bf16.mxu1 %v4289_v5 }
 0x119   : > { %3339 = vmatpush3.bf16.msra.mxu1 %v3777_v9  ;;  %v3824_v9 = vld [vmem:[#allocation10 + $0x60] ss:$20 sps:$4 sm:$0xff]  }
 0x11a   : > { %3340 = vmatprep.subr.bf16.mxu1 %v4289_v5 }
 0x189   : > { %v689_v10 = vpop.permute.xlu1 %688  ;;  %v684_v11 = vpop.permute.xlu0 %683 }
 0x18a   : > { %v696_v19 = vsub.f32 %v689_v10, %v694_v13  ;;  %v695_v20 = vsub.f32 %v684_v11, %v694_v13  ;;  %v3778_v10 = vld [vmem:[#allocation5 + $0x10] sm:$0xff]   ;;  %v3779_v11 = vld [vmem:[#allocation5 + $0x18] sm:$0xff]   ;;  %v3781_v13 = vld [vmem:[#allocation5 + $0x28] sm:$0xff]  }
 0x18b   : > { %3341 = vmatpush3.bf16.msra.mxu1 %v3778_v10  ;;  %v3825_v10 = vld [vmem:[#allocation10 + $0x58] ss:$20 sps:$4 sm:$0xff]  }
 0x18c   : > { %v698_v26 = vmul.f32 %v696_v19, %v696_v19  ;;  %v697_v27 = vmul.f32 %v695_v20, %v695_v20  ;;  %3342 = vmatprep.subr.bf16.mxu1 %v4289_v5 }
 0x18e   : > { %v707_v15 = vpop.permute.xlu1 %706  ;;  %v703_v16 = vpop.permute.xlu0 %702 }
 0x18f   : > { %v714_v17 = vsub.f32 %v707_v15, %v712_v12  ;;  %v713_v18 = vsub.f32 %v703_v16, %v712_v12  ;;  %3343 = vmatpush3.bf16.msra.mxu1 %v3779_v11  ;;  %v3780_v12 = vld [vmem:[#allocation5 + $0x20] sm:$0xff]   ;;  %v3782_v15 = vld [vmem:[#allocation5 + $0x30] sm:$0xff]   ;;  %v3831_v11 = vld [vmem:[#allocation10 + $0x84] ss:$20 sps:$4 sm:$0xff]  }
 0x190   : > { %3344 = vmatprep.subr.bf16.mxu1 %v4289_v5 }
 0x191   : > { %v716_v22 = vmul.f32 %v714_v17, %v714_v17  ;;  %v715_v23 = vmul.f32 %v713_v18, %v713_v18 }
 0x193   : > { %v721_v24 = vpop.permute.xlu1 %720  ;;  %v725_v25 = vpop.permute.xlu0 %724  ;;  %v718_v30 = vadd.f32 %v716_v22, %v698_v26  ;;  %v717_v31 = vadd.f32 %v715_v23, %v697_v27  ;;  %3345 = vmatpush3.bf16.msra.mxu1 %v3780_v12  ;;  %v3783_v22 = vld [vmem:[#allocation5 + $0x38] sm:$0xff]   ;;  %v3795_v26 = vld [vmem:[%s5110_s4 + $0x10] sm:$0xff]   ;;  %v3799_v27 = vld [vmem:[%s5110_s4 + $0x18] sm:$0xff]  }
 0x194   : > { %v731_v28 = vsub.f32 %v721_v24, %v730_v21  ;;  %v732_v29 = vsub.f32 %v725_v25, %v730_v21  ;;  %3346 = vmatprep.subr.bf16.mxu1 %v4289_v5  ;;  %v3786_v23 = vld [vmem:[#allocation10 + $0x4] ss:$20 sps:$4 sm:$0xff]   ;;  %v3787_v24 = vld [vmem:[%s5110_s4] sm:$0xff]   ;;  %v3828_v12 = vld [vmem:[#allocation10 + $0x88] ss:$20 sps:$4 sm:$0xff]  }
 0x195   : > { %v3791_v25 = vld [vmem:[%s5110_s4 + $0x8] sm:$0xff]  }
 0x196   : > { %v733_v32 = vmul.f32 %v731_v28, %v731_v28  ;;  %v734_v33 = vmul.f32 %v732_v29, %v732_v29  ;;  %v3803_v28 = vld [vmem:[%s5110_s4 + $0x20] sm:$0xff]   ;;  %v3807_v29 = vld [vmem:[%s5110_s4 + $0x28] sm:$0xff]  }
 0x197   : > { %3347 = vmatpush3.bf16.msra.mxu1 %v3781_v13  ;;  %v3829_v13 = vld [vmem:[#allocation10 + $0x80] ss:$20 sps:$4 sm:$0xff]  }
 0x198   : > { %v735_v34 = vadd.f32 %v733_v32, %v717_v31  ;;  %v736_v35 = vadd.f32 %v734_v33, %v718_v30  ;;  %3348 = vmatprep.subr.bf16.mxu1 %v4289_v5  ;;  %v3784_v32 = vld [vmem:[#allocation10] ss:$20 sps:$4 sm:$0xff]  }
 0x19a   : > { %3936 = vrsqrt.f32 %v735_v34  ;;  %vm739_vm0 = vcmp.eq.f32.partialorder %v735_v34, inf  ;;  %v742_v39 = vand.u32 2147483648, %v735_v34  ;;  %vm741_vm1 = vcmp.eq.f32.partialorder %v735_v34, 0.0 }
 0x19b   : > { %3938 = vrsqrt.f32 %v736_v35  ;;  %vm746_vm2 = vcmp.eq.f32.partialorder %v736_v35, inf  ;;  %v749_v42 = vand.u32 2147483648, %v736_v35  ;;  %vm748_vm3 = vcmp.eq.f32.partialorder %v736_v35, 0.0  ;;  %3349 = vmatpush3.bf16.msra.mxu1 %v3782_v15  ;;  %v3835_v15 = vld [vmem:[#allocation10 + $0xac] ss:$20 sps:$4 sm:$0xff]  }
 0x19c   : > { %3350 = vmatprep.subr.bf16.mxu1 %v4289_v5 }
 0x19f   : > { %3351 = vmatpush3.bf16.msra.mxu1 %v3783_v22  ;;  %v3841_v22 = vld [vmem:[#allocation10 + $0xf8] ss:$20 sps:$4 sm:$0xff]  }
 0x1a0   : > { %1375 = vmatprep.subr.bf16.mxu1 %v3786_v23  ;;  %v3847_v23 = vld [vmem:[#allocation10 + $0x124] ss:$20 sps:$4 sm:$0xff]  }
 0x1a4   : > { %v3937_v36 = vpop.eup %3936 }
 0x1a5   : > { %v3939_v37 = vpop.eup %3938  ;;  %v738_v38 = vmul.f32 %v3937_v36, %v735_v34  ;;  %v3794_v36 = vld [vmem:[#allocation10 + $0x54] ss:$20 sps:$4 sm:$0xff]  }
 0x1a6   : > { %v745_v40 = vmul.f32 %v3939_v37, %v736_v35  ;;  %v3792_v37 = vld [vmem:[#allocation10 + $0x50] ss:$20 sps:$4 sm:$0xff]  }
 0x1a7   : > { %v740_v41 = vsel %vm739_vm0, %v735_v34, %v738_v38  ;;  %v3790_v34 = vld [vmem:[#allocation10 + $0x2c] ss:$20 sps:$4 sm:$0xff]   ;;  %v3798_v38 = vld [vmem:[#allocation10 + $0x7c] ss:$20 sps:$4 sm:$0xff]  }
 0x1a8   : > { %v743_v43 = vsel %vm741_vm1, %v742_v39, %v740_v41  ;;  %v747_v44 = vsel %vm746_vm2, %v736_v35, %v745_v40  ;;  %v3788_v35 = vld [vmem:[#allocation10 + $0x28] ss:$20 sps:$4 sm:$0xff]   ;;  %v3796_v39 = vld [vmem:[#allocation10 + $0x78] ss:$20 sps:$4 sm:$0xff]   ;;  %v3800_v41 = vld [vmem:[#allocation10 + $0xa0] ss:$20 sps:$4 sm:$0xff]  }
 0x1a9   : > { %v751_v45 = vadd.f32 1e-05, %v743_v43  ;;  %v750_v46 = vsel %vm748_vm3, %v749_v42, %v747_v44  ;;  %v3802_v40 = vld [vmem:[#allocation10 + $0xa4] ss:$20 sps:$4 sm:$0xff]   ;;  %v3806_v42 = vld [vmem:[#allocation10 + $0xcc] ss:$20 sps:$4 sm:$0xff]  }
 0x1aa   : > { %v752_v47 = vadd.f32 1e-05, %v750_v46  ;;  %v3804_v43 = vld [vmem:[#allocation10 + $0xc8] ss:$20 sps:$4 sm:$0xff]  }
 0x1ab   : > { %v753_v48 = vmul.f32 %v751_v45, %v751_v45  ;;  %v3810_v44 = vld [vmem:[#allocation10 + $0xf4] ss:$20 sps:$4 sm:$0xff]   ;;  %v3808_v45 = vld [vmem:[#allocation10 + $0xf0] ss:$20 sps:$4 sm:$0xff]   ;;  %v3811_v46 = vld [vmem:[%s5110_s4 + $0x30] sm:$0xff]  }
 0x1ac   : > { %v754_v49 = vmul.f32 %v752_v47, %v752_v47  ;;  %v3814_v47 = vld [vmem:[#allocation10 + $0x11c] ss:$20 sps:$4 sm:$0xff]  }
 0x1ad   : > { %v755_v50 = vsub.f32 0.0, %v753_v48  ;;  %v3812_v48 = vld [vmem:[#allocation10 + $0x118] ss:$20 sps:$4 sm:$0xff]  }
 0x1ae   : > { %v756_v51 = vsub.f32 0.0, %v754_v49  ;;  %v3815_v49 = vld [vmem:[%s5110_s4 + $0x38] sm:$0xff]  }
 0x1af   : > { %v757_v52 = vmul.f32 25.0, %v755_v50  ;;  %v3819_v50 = vld [vmem:[#allocation10 + $0xc] ss:$20 sps:$4 sm:$0xff]  }
 0x1b0   : > { %v758_v53 = vmul.f32 25.0, %v756_v51  ;;  %v3030_v51 = vld [vmem:[#allocation7] ss:$0 sm:$0xff] }
 0x1b1   : > { %v760_v54 = vsel %vm759_vm4, %v757_v52, -inf }
 0x1b2   : > { %761 = vmax.xlane.f32.xlu1 %v760_v54  ;;  %v763_v55 = vsel %vm759_vm4, %v758_v53, -inf }
 0x1b3   : > { %764 = vmax.xlane.f32.xlu0 %v763_v55 }
 0x23f   : > { %v762_v56 = vpop.xlane.xlu1 %761 }
 0x240   : > { %v766_v57 = vsub.f32 %v757_v52, %v762_v56  ;;  %v765_v58 = vpop.xlane.xlu0 %764 }
 0x241   : > { %v767_v59 = vsub.f32 %v758_v53, %v765_v58  ;;  %v3816_v58 = vld [vmem:[#allocation10 + $0x10] ss:$20 sps:$4 sm:$0xff]  }
 0x242   : > { %v768_v60 = vmul.f32 1.442695, %v766_v57 }
 0x243   : > { %v770_v61 = vmul.f32 1.442695, %v767_v59 }
 0x244   : > { %3940 = vpow2.f32 %v768_v60 }
 0x245   : > { %3942 = vpow2.f32 %v770_v61 }
 0x24e   : > { %v3941_v62 = vpop.eup %3940 }
 0x24f   : > { %v3943_v63 = vpop.eup %3942  ;;  %v772_v1 = vsel %vm759_vm4, %v3941_v62, 0.0 }
 0x250   : > { %773 = vadd.xlane.f32.xlu1 %v772_v1  ;;  %v775_v2 = vsel %vm759_vm4, %v3943_v63, 0.0  ;;  %v3823_v1 = vld [vmem:[#allocation10 + $0x34] ss:$20 sps:$4 sm:$0xff]  }
 0x251   : > { %776 = vadd.xlane.f32.xlu0 %v775_v2  ;;  %v3820_v2 = vld [vmem:[#allocation10 + $0x38] ss:$20 sps:$4 sm:$0xff]  }
 0x2dd   : > { %v774_v16 = vpop.xlane.xlu1 %773 }
 0x2de   : > { %3944 = vrcp.f32 %v774_v16  ;;  %v777_v17 = vpop.xlane.xlu0 %776  ;;  %v3833_v16 = vld [vmem:[#allocation10 + $0xa8] ss:$20 sps:$4 sm:$0xff]  }
 0x2df   : > { %3946 = vrcp.f32 %v777_v17  ;;  %v3839_v17 = vld [vmem:[#allocation10 + $0xd4] ss:$20 sps:$4 sm:$0xff]  }
 0x2e8   : > { %v3945_v18 = vpop.eup %3944 }
 0x2e9   : > { %v3947_v19 = vpop.eup %3946  ;;  %v779_v20 = vmul.f32 %v3945_v18, %v3941_v62  ;;  %v3817_v62 = vld [vmem:[#allocation10 + $0x8] ss:$20 sps:$4 sm:$0xff]   ;;  %v3836_v18 = vld [vmem:[#allocation10 + $0xd8] ss:$20 sps:$4 sm:$0xff]  }
 0x2ea   : > { %v781_v21 = vmul.f32 %v3947_v19, %v3943_v63  ;;  %v3837_v19 = vld [vmem:[#allocation10 + $0xd0] ss:$20 sps:$4 sm:$0xff]  }
 0x2eb   : > { %3333 = vmatprep.mubr.msk.f32.mxu0 %vm759_vm4, %v779_v20  ;;  %v3843_v20 = vld [vmem:[#allocation10 + $0xfc] ss:$20 sps:$4 sm:$0xff]  }
 0x2ec   : > { %3334 = vmatmul.mubr.msk.f32.vlgmr.msra.gmra.mrb[0].mxu0 %vm759_vm4, %v781_v21  ;;  %v3840_v21 = vld [vmem:[#allocation10 + $0x100] ss:$20 sps:$4 sm:$0xff]  }
 0x2ed   : > { %3372 = vmatprep.mubr.msk.bf16.mxu0 %vm4290_vm5, %v4289_v5  ;;  %3357 = vmatpush3.bf16.msra.mxu0 %v3787_v24  ;;  %v3844_v24 = vld [vmem:[#allocation10 + $0x128] ss:$20 sps:$4 sm:$0xff]  }
 0x2ee   : > { %3358 = vmatprep.subr.bf16.mxu0 %v4289_v5 }
 0x2f1   : > { %3359 = vmatpush3.bf16.msra.mxu0 %v3791_v25  ;;  %v3845_v25 = vld [vmem:[#allocation10 + $0x120] ss:$20 sps:$4 sm:$0xff]  }
 0x2f2   : > { %3360 = vmatprep.subr.bf16.mxu0 %v4289_v5 }
 0x2f5   : > { %3361 = vmatpush3.bf16.msra.mxu0 %v3795_v26  ;;  %v3848_v26 = vld [vmem:[#allocation11] sm:$0xff]  }
 0x2f6   : > { %3362 = vmatprep.subr.bf16.mxu0 %v4289_v5 }
 0x2f9   : > { %3363 = vmatpush3.bf16.msra.mxu0 %v3799_v27  ;;  %v3849_v27 = vld [vmem:[#allocation11 + $0x8] sm:$0xff]  }
 0x2fa   : > { %3364 = vmatprep.subr.bf16.mxu0 %v4289_v5 }
 0x2fd   : > { %3365 = vmatpush3.bf16.msra.mxu0 %v3803_v28  ;;  %v3850_v28 = vld [vmem:[#allocation11 + $0x10] sm:$0xff]  }
 0x2fe   : > { %3366 = vmatprep.subr.bf16.mxu0 %v4289_v5 }
 0x301   : > { %3367 = vmatpush3.bf16.msra.mxu0 %v3807_v29  ;;  %v3851_v29 = vld [vmem:[#allocation11 + $0x18] sm:$0xff]  }
 0x302   : > { %3368 = vmatprep.subr.bf16.mxu0 %v4289_v5 }
 0x305   : > { %3369 = vmatpush3.bf16.msra.mxu0 %v3811_v46 }
 0x306   : > { %3370 = vmatprep.subr.bf16.mxu0 %v4289_v5 }
 0x309   : > { %3371 = vmatpush3.bf16.msra.mxu0 %v3815_v49 }
 0x30a   : > { %1418 = vmatprep.subr.bf16.mxu0 %v3819_v50 }
 0x3bf   : > { %v3335_v30 = vpop.f32.mrb[0].mxu0 }
 0x3c0   : > { %v854_v31 = vpop.f32.mrb[1].mxu0 }
 0x3c1   : > { %v880_v33 = vpack.c.bf16 %v3335_v30, %v854_v31  ;;  %v3852_v30 = vld [vmem:[#allocation11 + $0x20] sm:$0xff]   ;;  %v3853_v31 = vld [vmem:[#allocation11 + $0x28] sm:$0xff]  }
 0x3c3   : > { %3353 = vmatmul.mubr.bf16.vlgmr.msra.gmra.mrb[0].mxu1 %v880_v33  ;;  %v3855_v33 = vld [vmem:[#allocation11 + $0x38] sm:$0xff]  }
 0x3c4   : > { %1376 = vmatpush1.bf16.msra.mxu1 %v3784_v32  ;;  %1407 = vmatprep.mubr.bf16.mxu1 %v4286_v0  ;;  %v3854_v32 = vld [vmem:[#allocation11 + $0x30] sm:$0xff]  }
 0x3c5   : > { %1377 = vmatprep.subr.bf16.mxu1 %v3790_v34  ;;  %v3856_v34 = vld [vmem:[#allocation13] sm:$0xff]  }
 0x3c8   : > { %1378 = vmatpush1.bf16.msra.mxu1 %v3788_v35  ;;  %v3857_v35 = vld [vmem:[#allocation13 + $0x8] sm:$0xff]  }
 0x3c9   : > { %1379 = vmatprep.subr.bf16.mxu1 %v3794_v36  ;;  %v3858_v36 = vld [vmem:[#allocation13 + $0x10] sm:$0xff]  }
 0x3cc   : > { %1380 = vmatpush1.bf16.msra.mxu1 %v3792_v37  ;;  %v3859_v37 = vld [vmem:[#allocation13 + $0x18] sm:$0xff]  }
 0x3cd   : > { %1381 = vmatprep.subr.bf16.mxu1 %v3798_v38  ;;  %v3860_v38 = vld [vmem:[#allocation13 + $0x20] sm:$0xff]  }
 0x3d0   : > { %1382 = vmatpush1.bf16.msra.mxu1 %v3796_v39  ;;  %v3861_v39 = vld [vmem:[#allocation13 + $0x28] sm:$0xff]  }
 0x3d1   : > { %1383 = vmatprep.subr.bf16.mxu1 %v3802_v40  ;;  %v4805_v40 = vld [vmem:[%s5111_s8] sm:$0x1f]  ;;  %s4291_s8 = smov [#allocation16]  }
 0x3d2   : > { %s4178_s27 = sshll.u32 %s4291_s8, 4  ;;  %s4179_s27 = int_to_ptr.vmem [resolvable:$false] %s4178_s27 }
 0x3d3   : > { %p4181_p4 = scmp.lt.s32.totalorder %s4995_s1, %s4179_s27 }
 0x3d4   : > { %1384 = vmatpush1.bf16.msra.mxu1 %v3800_v41  ;;  %v1145_v41 = vrot.slane %v4805_v40, %v693_v8 }
 0x3d5   : > { %1385 = vmatprep.subr.bf16.mxu1 %v3806_v42 }
 0x3d8   : > { %1386 = vmatpush1.bf16.msra.mxu1 %v3804_v43  ;;  %v3039_v43 = vld [vmem:[#allocation8] ss:$0 sm:$0xff] }
 0x3d9   : > { %1387 = vmatprep.subr.bf16.mxu1 %v3810_v44 }
 0x3dc   : > { %1388 = vmatpush1.bf16.msra.mxu1 %v3808_v45 }
 0x3dd   : > { %1389 = vmatprep.subr.bf16.mxu1 %v3814_v47 }
 0x3e0   : > { %1390 = vmatpush1.bf16.msra.mxu1 %v3812_v48 }
 0x3e1   : > { %3376 = vmatprep.subr.bf16.mxu1 %v4289_v5 }
 0x496   : > { %v969_v52 = vpop.f32.mrb[0].mxu1 }
 0x497   : > { %v970_v53 = vadd.f32 %v3030_v51, %v969_v52  ;;  %v3354_v54 = vpop.f32.mrb[1].mxu1 }
 0x498   : > { %v972_v55 = vpop.f32.mrb[2].mxu1 }
 0x499   : > { %v973_v56 = vadd.f32 %v3030_v51, %v972_v55  ;;  %v3355_v57 = vpop.f32.mrb[3].mxu1  ;;  %v976_v59 = vmax.f32 %v970_v53, 0.0 }
 0x49b   : > { %v977_v60 = vmax.f32 %v973_v56, 0.0  ;;  %v4767_v61 = vpack.c.bf16 %v973_v56, %v970_v53 }
 0x49d   : > { %v995_v63 = vpack.c.bf16 %v977_v60, %v976_v59  ;;  %1408 = vmatmul.mubr.bf16.vlgmr.msra.gmra.mrb[4].mxu1 %v4767_v61 }
 0x49e   : > { %3377 = vmatpush3.bf16.msra.mxu1 %v3816_v58  ;;  %3392 = vmatprep.mubr.msk.bf16.mxu1 %vm4290_vm5, %v4289_v5 }
 0x49f   : > { %3373 = vmatmul.mubr.bf16.vlgmr.msra.gmra.mrb[4].mxu0 %v995_v63  ;;  %3378 = vmatprep.subr.bf16.mxu1 %v4289_v5  ;;  %v3862_v63 = vld [vmem:[#allocation13 + $0x30] sm:$0xff]  }
 0x4a0   : > { %1419 = vmatpush1.bf16.msra.mxu0 %v3817_v62  ;;  %1450 = vmatprep.mubr.bf16.mxu0 %v4286_v0  ;;  %v3832_v0 = vld [vmem:[#allocation10 + $0xb0] ss:$20 sps:$4 sm:$0xff]  }
 0x4a1   : > { %1420 = vmatprep.subr.bf16.mxu0 %v3823_v1  ;;  %v3863_v1 = vld [vmem:[#allocation13 + $0x38] sm:$0xff]  }
 0x4a2   : > { %3379 = vmatpush3.bf16.msra.mxu1 %v3820_v2  ;;  %v3864_v2 = vld [vmem:[#allocation11 + $0x40] sm:$0xff]  }
 0x4a3   : > { %3380 = vmatprep.subr.bf16.mxu1 %v4289_v5 }
 0x4a4   : > { %1421 = vmatpush1.bf16.msra.mxu0 %v3821_v3  ;;  %v3865_v3 = vld [vmem:[#allocation11 + $0x48] sm:$0xff]  }
 0x4a5   : > { %1422 = vmatprep.subr.bf16.mxu0 %v3827_v4  ;;  %v3866_v4 = vld [vmem:[#allocation11 + $0x50] sm:$0xff]  }
 0x4a6   : > { %3381 = vmatpush3.bf16.msra.mxu1 %v3824_v9  ;;  %v3867_v9 = vld [vmem:[#allocation11 + $0x58] sm:$0xff]  }
 0x4a7   : > { %3382 = vmatprep.subr.bf16.mxu1 %v4289_v5 }
 0x4a8   : > { %1423 = vmatpush1.bf16.msra.mxu0 %v3825_v10  ;;  %v3868_v10 = vld [vmem:[#allocation11 + $0x60] sm:$0xff]  }
 0x4a9   : > { %1424 = vmatprep.subr.bf16.mxu0 %v3831_v11  ;;  %v3088_v11 = vld [vmem:[%s5112_s25] ss:$0 sm:$0xff] }
 0x4aa   : > { %3383 = vmatpush3.bf16.msra.mxu1 %v3828_v12 }
 0x4ab   : > { %3384 = vmatprep.subr.bf16.mxu1 %v4289_v5 }
 0x4ac   : > { %1425 = vmatpush1.bf16.msra.mxu0 %v3829_v13 }
 0x4ad   : > { %1426 = vmatprep.subr.bf16.mxu0 %v3835_v15 }
 0x4ae   : > { %3385 = vmatpush3.bf16.msra.mxu1 %v3832_v0 }
 0x4af   : > { %3386 = vmatprep.subr.bf16.mxu1 %v4289_v5 }
 0x4b0   : > { %1427 = vmatpush1.bf16.msra.mxu0 %v3833_v16 }
 0x4b1   : > { %1428 = vmatprep.subr.bf16.mxu0 %v3839_v17 }
 0x4b2   : > { %3387 = vmatpush3.bf16.msra.mxu1 %v3836_v18 }
 0x4b3   : > { %3388 = vmatprep.subr.bf16.mxu1 %v4289_v5 }
 0x4b4   : > { %1429 = vmatpush1.bf16.msra.mxu0 %v3837_v19 }
 0x4b5   : > { %1430 = vmatprep.subr.bf16.mxu0 %v3843_v20 }
 0x4b6   : > { %3389 = vmatpush3.bf16.msra.mxu1 %v3840_v21  ;;  %v3869_v21 = vld [vmem:[#allocation11 + $0x68] sm:$0xff]  }
 0x4b7   : > { %3390 = vmatprep.subr.bf16.mxu1 %v4289_v5 }
 0x4b8   : > { %1431 = vmatpush1.bf16.msra.mxu0 %v3841_v22  ;;  %v3870_v22 = vld [vmem:[#allocation11 + $0x70] sm:$0xff]  }
 0x4b9   : > { %1432 = vmatprep.subr.bf16.mxu0 %v3847_v23  ;;  %v3871_v23 = vld [vmem:[#allocation11 + $0x78] sm:$0xff]  }
 0x4ba   : > { %3391 = vmatpush3.bf16.msra.mxu1 %v3844_v24  ;;  %v3872_v24 = vld [vmem:[#allocation13 + $0x40] sm:$0xff]  }
 0x4bb   : > { %3416 = vmatprep.subr.bf16.mxu1 %v4289_v5 }
 0x4bc   : > { %1433 = vmatpush1.bf16.msra.mxu0 %v3845_v25  ;;  %v3873_v25 = vld [vmem:[#allocation13 + $0x48] sm:$0xff]  }
 0x4bd   : > { %3393 = vmatmul.mubr.bf16.vlgmr.msra.gmra.mrb[8].mxu1 %v4767_v61  ;;  %3396 = vmatprep.subr.bf16.mxu0 %v4289_v5 }
 0x4be   : > { %3432 = vmatprep.mubr.msk.bf16.mxu1 %vm4290_vm5, %v4289_v5  ;;  %3417 = vmatpush3.bf16.msra.mxu1 %v3856_v34 }
 0x4bf   : > { %1451 = vmatmul.mubr.bf16.vlgmr.msra.gmra.mrb[8].mxu0 %v4767_v61  ;;  %3418 = vmatprep.subr.bf16.mxu1 %v4289_v5 }
 0x4c0   : > { %3397 = vmatpush3.bf16.msra.mxu0 %v3848_v26  ;;  %3412 = vmatprep.mubr.msk.bf16.mxu0 %vm4290_vm5, %v4289_v5  ;;  %v3874_v26 = vld [vmem:[#allocation13 + $0x50] sm:$0xff]  }
 0x4c1   : > { %3398 = vmatprep.subr.bf16.mxu0 %v4289_v5 }
 0x4c2   : > { %3419 = vmatpush3.bf16.msra.mxu1 %v3857_v35 }
 0x4c3   : > { %3420 = vmatprep.subr.bf16.mxu1 %v4289_v5 }
 0x4c4   : > { %3399 = vmatpush3.bf16.msra.mxu0 %v3849_v27  ;;  %v3875_v27 = vld [vmem:[#allocation13 + $0x58] sm:$0xff]  }
 0x4c5   : > { %3400 = vmatprep.subr.bf16.mxu0 %v4289_v5 }
 0x4c6   : > { %3421 = vmatpush3.bf16.msra.mxu1 %v3858_v36 }
 0x4c7   : > { %3422 = vmatprep.subr.bf16.mxu1 %v4289_v5 }
 0x4c8   : > { %3401 = vmatpush3.bf16.msra.mxu0 %v3850_v28  ;;  %v3876_v28 = vld [vmem:[#allocation13 + $0x60] sm:$0xff]  }
 0x4c9   : > { %3402 = vmatprep.subr.bf16.mxu0 %v4289_v5 }
 0x4ca   : > { %3423 = vmatpush3.bf16.msra.mxu1 %v3859_v37 }
 0x4cb   : > { %3424 = vmatprep.subr.bf16.mxu1 %v4289_v5 }
 0x4cc   : > { %3403 = vmatpush3.bf16.msra.mxu0 %v3851_v29  ;;  %v3877_v29 = vld [vmem:[#allocation13 + $0x68] sm:$0xff]  }
 0x4cd   : > { %3404 = vmatprep.subr.bf16.mxu0 %v4289_v5 }
 0x4ce   : > { %3425 = vmatpush3.bf16.msra.mxu1 %v3860_v38 }
 0x4cf   : > { %3426 = vmatprep.subr.bf16.mxu1 %v4289_v5 }
 0x4d0   : > { %3405 = vmatpush3.bf16.msra.mxu0 %v3852_v30  ;;  %v3097_v30 = vld [vmem:[%s5113_s30] ss:$0 sm:$0xff] }
 0x4d1   : > { %3406 = vmatprep.subr.bf16.mxu0 %v4289_v5 }
 0x4d2   : > { %3427 = vmatpush3.bf16.msra.mxu1 %v3861_v39 }
 0x4d3   : > { %3428 = vmatprep.subr.bf16.mxu1 %v4289_v5 }
 0x4d4   : > { %3407 = vmatpush3.bf16.msra.mxu0 %v3853_v31  ;;  %v1149_v31 = vrot.slane %v4805_v40, %v711_v7 }
 0x4d5   : > { %3408 = vmatprep.subr.bf16.mxu0 %v4289_v5 }
 0x4d6   : > { %3429 = vmatpush3.bf16.msra.mxu1 %v3862_v63 }
 0x4d7   : > { %3430 = vmatprep.subr.bf16.mxu1 %v4289_v5 }
 0x4d8   : > { %3409 = vmatpush3.bf16.msra.mxu0 %v3854_v32 }
 0x4d9   : > { %3410 = vmatprep.subr.bf16.mxu0 %v4289_v5 }
 0x4da   : > { %3431 = vmatpush3.bf16.msra.mxu1 %v3863_v1 }
 0x4db   : > { %3456 = vmatprep.subr.bf16.mxu1 %v4289_v5 }
 0x4dc   : > { %3411 = vmatpush3.bf16.msra.mxu0 %v3855_v33 }
 0x4dd   : > { %3436 = vmatprep.subr.bf16.mxu0 %v4289_v5 }
 0x570   : > { %v1409_v42 = vpop.f32.mrb[4].mxu1 }
 0x571   : > { %v4810_v44 = vpop.f32.mrb[5].mxu1  ;;  %v1410_v47 = vadd.f32 %v1409_v42, %v1145_v41 }
 0x572   : > { %v1084_v45 = vpop.f32.mrb[4].mxu0  ;;  %v1413_v46 = vpop.f32.mrb[6].mxu1  ;;  %v1412_v36 = vadd.f32 %v4810_v44, %v1149_v31  ;;  %v3878_v44 = vld [vmem:[#allocation13 + $0x70] sm:$0xff]  }
 0x573   : > { %v1085_v48 = vadd.f32 %v3039_v43, %v1084_v45  ;;  %v3374_v49 = vpop.f32.mrb[5].mxu0  ;;  %v4812_v50 = vpop.f32.mrb[7].mxu1  ;;  %v1414_v53 = vadd.f32 %v1413_v46, %v1145_v41 }
 0x574   : > { %v1087_v51 = vpop.f32.mrb[6].mxu0  ;;  %v1416_v41 = vadd.f32 %v4812_v50, %v1149_v31  ;;  %v3880_v49 = vld [vmem:[#allocation11 + $0x80] sm:$0xff]   ;;  %v3881_v50 = vld [vmem:[#allocation11 + $0x88] sm:$0xff]  }
 0x575   : > { %v4814_v52 = vadd.f32 %v1410_v47, %v1085_v48  ;;  %v1088_v54 = vadd.f32 %v3039_v43, %v1087_v51  ;;  %v3375_v55 = vpop.f32.mrb[7].mxu0  ;;  %v3879_v48 = vld [vmem:[#allocation13 + $0x78] sm:$0xff]   ;;  %v3882_v51 = vld [vmem:[#allocation11 + $0x90] sm:$0xff]  }
 0x577   : > { %v4816_v56 = vadd.f32 %v1414_v53, %v1088_v54  ;;  %v1504_v8 = vmax.f32 %v4814_v52, 0.0  ;;  %v3884_v53 = vld [vmem:[#allocation11 + $0xa0] sm:$0xff]   ;;  %v3107_v54 = vld [vmem:[%s5112_s25 + $0x1] ss:$0 sm:$0xff] }
 0x579   : > { %v1505_v57 = vmax.f32 %v4816_v56, 0.0 }
 0x57b   : > { %v1523_v58 = vpack.c.bf16 %v1505_v57, %v1504_v8 }
 0x57d   : > { %3413 = vmatmul.mubr.bf16.vlgmr.msra.gmra.mrb[12].mxu0 %v1523_v58 }
 0x57e   : > { %3452 = vmatprep.mubr.msk.bf16.mxu0 %vm4290_vm5, %v4289_v5  ;;  %3437 = vmatpush3.bf16.msra.mxu0 %v3864_v2 }
 0x57f   : > { %3438 = vmatprep.subr.bf16.mxu0 %v4289_v5 }
 0x582   : > { %3439 = vmatpush3.bf16.msra.mxu0 %v3865_v3 }
 0x583   : > { %3440 = vmatprep.subr.bf16.mxu0 %v4289_v5 }
 0x586   : > { %3441 = vmatpush3.bf16.msra.mxu0 %v3866_v4  ;;  %v3885_v4 = vld [vmem:[#allocation11 + $0xa8] sm:$0xff]  }
 0x587   : > { %3442 = vmatprep.subr.bf16.mxu0 %v4289_v5 }
 0x58a   : > { %3443 = vmatpush3.bf16.msra.mxu0 %v3867_v9  ;;  %v3886_v9 = vld [vmem:[#allocation11 + $0xb0] sm:$0xff]  }
 0x58b   : > { %3444 = vmatprep.subr.bf16.mxu0 %v4289_v5 }
 0x58e   : > { %3445 = vmatpush3.bf16.msra.mxu0 %v3868_v10  ;;  %v3887_v10 = vld [vmem:[#allocation11 + $0xb8] sm:$0xff]  }
 0x58f   : > { %3446 = vmatprep.subr.bf16.mxu0 %v4289_v5 }
 0x592   : > { %v4822_v59 = vpop.f32.mrb[8].mxu0  ;;  %3447 = vmatpush3.bf16.msra.mxu0 %v3869_v21 }
 0x593   : > { %v4824_v60 = vpop.f32.mrb[9].mxu0  ;;  %3448 = vmatprep.subr.bf16.mxu0 %v4289_v5 }
 0x594   : > { %v4826_v61 = vpop.f32.mrb[10].mxu0 }
 0x595   : > { %v4828_v62 = vpop.f32.mrb[11].mxu0 }
 0x596   : > { %3449 = vmatpush3.bf16.msra.mxu0 %v3870_v22 }
 0x597   : > { %3450 = vmatprep.subr.bf16.mxu0 %v4289_v5 }
 0x59a   : > { %3451 = vmatpush3.bf16.msra.mxu0 %v3871_v23 }
 0x59b   : > { %3476 = vmatprep.subr.bf16.mxu0 %v4289_v5 }
 0x650   : > { %v1612_v12 = vpop.f32.mrb[12].mxu0 }
 0x651   : > { %v1613_v13 = vadd.f32 %v3088_v11, %v1612_v12  ;;  %v3414_v15 = vpop.f32.mrb[13].mxu0  ;;  %v3889_v12 = vld [vmem:[#allocation13 + $0x88] sm:$0xff]  }
 0x652   : > { %v1615_v0 = vpop.f32.mrb[14].mxu0  ;;  %v3891_v15 = vld [vmem:[#allocation13 + $0x98] sm:$0xff]  }
 0x653   : > { %v1616_v16 = vadd.f32 %v3088_v11, %v1615_v0  ;;  %v3415_v17 = vpop.f32.mrb[15].mxu0  ;;  %v1619_v18 = vmax.f32 %v1613_v13, 0.0  ;;  %v3888_v11 = vld [vmem:[#allocation13 + $0x80] sm:$0xff]   ;;  %v3890_v13 = vld [vmem:[#allocation13 + $0x90] sm:$0xff]  }
 0x654   : > { %v3892_v0 = vld [vmem:[#allocation13 + $0xa0] sm:$0xff]   ;;  %v3117_v17 = vld [vmem:[%s5113_s30 + $0x1] ss:$0 sm:$0xff] }
 0x655   : > { %v1620_v19 = vmax.f32 %v1616_v16, 0.0  ;;  %v3893_v16 = vld [vmem:[#allocation13 + $0xa8] sm:$0xff]  }
 0x657   : > { %v1638_v20 = vpack.c.bf16 %v1620_v19, %v1619_v18  ;;  %v1153_v18 = vrot.slane %v4805_v40, %v729_v14 }
 0x659   : > { %3433 = vmatmul.mubr.bf16.vlgmr.msra.gmra.mrb[12].mxu1 %v1638_v20  ;;  %v1453_v23 = vadd.f32 %v4822_v59, %v1153_v18  ;;  %v3894_v59 = vld [vmem:[#allocation13 + $0xb0] sm:$0xff]  }
 0x65a   : > { %3472 = vmatprep.mubr.msk.bf16.mxu1 %vm4290_vm5, %v4289_v5  ;;  %3457 = vmatpush3.bf16.msra.mxu1 %v3872_v24 }
 0x65b   : > { %3458 = vmatprep.subr.bf16.mxu1 %v4289_v5 }
 0x65e   : > { %3459 = vmatpush3.bf16.msra.mxu1 %v3873_v25 }
 0x65f   : > { %3460 = vmatprep.subr.bf16.mxu1 %v4289_v5 }
 0x662   : > { %3461 = vmatpush3.bf16.msra.mxu1 %v3874_v26 }
 0x663   : > { %3462 = vmatprep.subr.bf16.mxu1 %v4289_v5 }
 0x666   : > { %3463 = vmatpush3.bf16.msra.mxu1 %v3875_v27  ;;  %v1457_v27 = vadd.f32 %v4826_v61, %v1153_v18  ;;  %v3895_v61 = vld [vmem:[#allocation13 + $0xb8] sm:$0xff]  }
 0x667   : > { %3464 = vmatprep.subr.bf16.mxu1 %v4289_v5 }
 0x66a   : > { %3465 = vmatpush3.bf16.msra.mxu1 %v3876_v28 }
 0x66b   : > { %3466 = vmatprep.subr.bf16.mxu1 %v4289_v5 }
 0x66e   : > { %3467 = vmatpush3.bf16.msra.mxu1 %v3877_v29 }
 0x66f   : > { %3468 = vmatprep.subr.bf16.mxu1 %v4289_v5 }
 0x672   : > { %3469 = vmatpush3.bf16.msra.mxu1 %v3878_v44 }
 0x673   : > { %3470 = vmatprep.subr.bf16.mxu1 %v4289_v5 }
 0x676   : > { %3471 = vmatpush3.bf16.msra.mxu1 %v3879_v48  ;;  %v3901_v48 = vld [vmem:[#allocation11 + $0xe8] sm:$0xff]  }
 0x677   : > { %3496 = vmatprep.subr.bf16.mxu1 %v4289_v5 }
 0x72c   : > { %v1727_v32 = vpop.f32.mrb[12].mxu1 }
 0x72d   : > { %v1728_v33 = vadd.f32 %v3097_v30, %v1727_v32  ;;  %v3434_v34 = vpop.f32.mrb[13].mxu1 }
 0x72e   : > { %v1730_v35 = vpop.f32.mrb[14].mxu1  ;;  %v3897_v34 = vld [vmem:[#allocation11 + $0xc8] sm:$0xff]  }
 0x72f   : > { %v1734_v37 = vadd.f32 %v1728_v33, %v4814_v52  ;;  %v1731_v38 = vadd.f32 %v3097_v30, %v1730_v35  ;;  %v3435_v39 = vpop.f32.mrb[15].mxu1  ;;  %v3883_v52 = vld [vmem:[#allocation11 + $0x98] sm:$0xff]   ;;  %v3896_v33 = vld [vmem:[#allocation11 + $0xc0] sm:$0xff]   ;;  %v3898_v35 = vld [vmem:[#allocation11 + $0xd0] sm:$0xff]  }
 0x731   : > { %v4860_v42 = vadd.f32 %v1734_v37, %v1412_v36  ;;  %v1735_v43 = vadd.f32 %v1731_v38, %v4816_v56  ;;  %v3899_v36 = vld [vmem:[#allocation11 + $0xd8] sm:$0xff]   ;;  %v3900_v37 = vld [vmem:[#allocation11 + $0xe0] sm:$0xff]   ;;  %v3127_v38 = vld [vmem:[%s5112_s25 + $0x2] ss:$0 sm:$0xff] }
 0x733   : > { %v4863_v45 = vadd.f32 %v1735_v43, %v1416_v41  ;;  %v1738_v7 = vmax.f32 %v4860_v42, 0.0 }
 0x735   : > { %v1739_v46 = vmax.f32 %v4863_v45, 0.0 }
 0x737   : > { %v1759_v47 = vpack.c.bf16 %v1739_v46, %v1738_v7 }
 0x739   : > { %3453 = vmatmul.mubr.bf16.vlgmr.msra.gmra.mrb[16].mxu0 %v1759_v47 }
 0x73a   : > { %3492 = vmatprep.mubr.msk.bf16.mxu0 %vm4290_vm5, %v4289_v5  ;;  %3477 = vmatpush3.bf16.msra.mxu0 %v3880_v49  ;;  %v3902_v49 = vld [vmem:[#allocation11 + $0xf0] sm:$0xff]  }
 0x73b   : > { %3478 = vmatprep.subr.bf16.mxu0 %v4289_v5 }
 0x73e   : > { %3479 = vmatpush3.bf16.msra.mxu0 %v3881_v50  ;;  %v3903_v50 = vld [vmem:[#allocation11 + $0xf8] sm:$0xff]  }
 0x73f   : > { %3480 = vmatprep.subr.bf16.mxu0 %v4289_v5 }
 0x742   : > { %3481 = vmatpush3.bf16.msra.mxu0 %v3882_v51  ;;  %v3904_v51 = vld [vmem:[#allocation13 + $0xc0] sm:$0xff]  }
 0x743   : > { %3482 = vmatprep.subr.bf16.mxu0 %v4289_v5 }
 0x746   : > { %3483 = vmatpush3.bf16.msra.mxu0 %v3883_v52  ;;  %v3905_v52 = vld [vmem:[#allocation13 + $0xc8] sm:$0xff]  }
 0x747   : > { %3484 = vmatprep.subr.bf16.mxu0 %v4289_v5 }
 0x74a   : > { %3485 = vmatpush3.bf16.msra.mxu0 %v3884_v53  ;;  %v3906_v53 = vld [vmem:[#allocation13 + $0xd0] sm:$0xff]  }
 0x74b   : > { %3486 = vmatprep.subr.bf16.mxu0 %v4289_v5 }
 0x74e   : > { %3487 = vmatpush3.bf16.msra.mxu0 %v3885_v4 }
 0x74f   : > { %3488 = vmatprep.subr.bf16.mxu0 %v4289_v5 }
 0x752   : > { %3489 = vmatpush3.bf16.msra.mxu0 %v3886_v9 }
 0x753   : > { %3490 = vmatprep.subr.bf16.mxu0 %v4289_v5 }
 0x756   : > { %3491 = vmatpush3.bf16.msra.mxu0 %v3887_v10 }
 0x757   : > { %3516 = vmatprep.subr.bf16.mxu0 %v4289_v5 }
 0x80c   : > { %v1848_v55 = vpop.f32.mrb[16].mxu0 }
 0x80d   : > { %v1849_v56 = vadd.f32 %v3107_v54, %v1848_v55  ;;  %v3454_v8 = vpop.f32.mrb[17].mxu0  ;;  %v3908_v55 = vld [vmem:[#allocation13 + $0xe0] sm:$0xff]  }
 0x80e   : > { %v1851_v57 = vpop.f32.mrb[18].mxu0  ;;  %v1156_v8 = vsub.s32 3, %v4700_v6 }
 0x80f   : > { %v1852_v58 = vadd.f32 %v3107_v54, %v1851_v57  ;;  %v3455_v63 = vpop.f32.mrb[19].mxu0  ;;  %v1855_v1 = vmax.f32 %v1849_v56, 0.0  ;;  %v3907_v54 = vld [vmem:[#allocation13 + $0xd8] sm:$0xff]   ;;  %v3909_v56 = vld [vmem:[#allocation13 + $0xe8] sm:$0xff]  }
 0x810   : > { %v3137_v57 = vld [vmem:[%s5113_s30 + $0x2] ss:$0 sm:$0xff] }
 0x811   : > { %v1856_v2 = vmax.f32 %v1852_v58, 0.0  ;;  %v1157_v58 = vrot.slane %v4805_v40, %v1156_v8  ;;  %v3929_v8 = vld [vmem:[#allocation14 + $0x8] sm:$0xff]  }
 0x813   : > { %v1876_v3 = vpack.c.bf16 %v1856_v2, %v1855_v1  ;;  %v1455_v4 = vadd.f32 %v4824_v60, %v1157_v58  ;;  %v3910_v60 = vld [vmem:[#allocation13 + $0xf0] sm:$0xff]  }
 0x815   : > { %3473 = vmatmul.mubr.bf16.vlgmr.msra.gmra.mrb[16].mxu1 %v1876_v3 }
 0x816   : > { %3512 = vmatprep.mubr.msk.bf16.mxu1 %vm4290_vm5, %v4289_v5  ;;  %3497 = vmatpush3.bf16.msra.mxu1 %v3888_v11 }
 0x817   : > { %3498 = vmatprep.subr.bf16.mxu1 %v4289_v5 }
 0x81a   : > { %3499 = vmatpush3.bf16.msra.mxu1 %v3889_v12  ;;  %v1459_v12 = vadd.f32 %v4828_v62, %v1157_v58  ;;  %v3911_v62 = vld [vmem:[#allocation13 + $0xf8] sm:$0xff]  }
 0x81b   : > { %3500 = vmatprep.subr.bf16.mxu1 %v4289_v5  ;;  %v3931_v58 = vld [vmem:[#allocation14 + $0x18] sm:$0xff]  }
 0x81e   : > { %3501 = vmatpush3.bf16.msra.mxu1 %v3890_v13 }
 0x81f   : > { %3502 = vmatprep.subr.bf16.mxu1 %v4289_v5 }
 0x822   : > { %3503 = vmatpush3.bf16.msra.mxu1 %v3891_v15 }
 0x823   : > { %3504 = vmatprep.subr.bf16.mxu1 %v4289_v5 }
 0x826   : > { %3505 = vmatpush3.bf16.msra.mxu1 %v3892_v0 }
 0x827   : > { %3506 = vmatprep.subr.bf16.mxu1 %v4289_v5 }
 0x82a   : > { %3507 = vmatpush3.bf16.msra.mxu1 %v3893_v16 }
 0x82b   : > { %3508 = vmatprep.subr.bf16.mxu1 %v4289_v5 }
 0x82e   : > { %3509 = vmatpush3.bf16.msra.mxu1 %v3894_v59 }
 0x82f   : > { %3510 = vmatprep.subr.bf16.mxu1 %v4289_v5 }
 0x832   : > { %3511 = vmatpush3.bf16.msra.mxu1 %v3895_v61  ;;  %v3918_v61 = vld [vmem:[#allocation11 + $0x130] sm:$0xff]  }
 0x833   : > { %3536 = vmatprep.subr.bf16.mxu1 %v4289_v5 }
 0x8e8   : > { %v1965_v19 = vpop.f32.mrb[16].mxu1 }
 0x8e9   : > { %v1966_v20 = vadd.f32 %v3117_v17, %v1965_v19  ;;  %v3474_v21 = vpop.f32.mrb[17].mxu1  ;;  %v3912_v19 = vld [vmem:[#allocation11 + $0x100] sm:$0xff]  }
 0x8ea   : > { %v1968_v22 = vpop.f32.mrb[18].mxu1  ;;  %v3914_v21 = vld [vmem:[#allocation11 + $0x110] sm:$0xff]  }
 0x8eb   : > { %v1972_v24 = vadd.f32 %v1966_v20, %v4860_v42  ;;  %v1969_v25 = vadd.f32 %v3117_v17, %v1968_v22  ;;  %v3475_v26 = vpop.f32.mrb[19].mxu1  ;;  %v3913_v20 = vld [vmem:[#allocation11 + $0x108] sm:$0xff]   ;;  %v3915_v22 = vld [vmem:[#allocation11 + $0x118] sm:$0xff]  }
 0x8ed   : > { %v4899_v28 = vadd.f32 %v1972_v24, %v1453_v23  ;;  %v1973_v29 = vadd.f32 %v1969_v25, %v4863_v45  ;;  %v3916_v23 = vld [vmem:[#allocation11 + $0x120] sm:$0xff]   ;;  %v3917_v24 = vld [vmem:[#allocation11 + $0x128] sm:$0xff]  }
 0x8ee   : > { %v3147_v25 = vld [vmem:[%s5112_s25 + $0x3] ss:$0 sm:$0xff] }
 0x8ef   : > { %v4902_v30 = vadd.f32 %v1973_v29, %v1457_v27  ;;  %v1976_v14 = vmax.f32 %v4899_v28, 0.0 }
 0x8f1   : > { %v1977_v31 = vmax.f32 %v4902_v30, 0.0 }
 0x8f3   : > { %v1997_v32 = vpack.c.bf16 %v1977_v31, %v1976_v14 }
 0x8f5   : > { %3493 = vmatmul.mubr.bf16.vlgmr.msra.gmra.mrb[20].mxu0 %v1997_v32 }
 0x8f6   : > { %3532 = vmatprep.mubr.msk.bf16.mxu0 %vm4290_vm5, %v4289_v5  ;;  %3517 = vmatpush3.bf16.msra.mxu0 %v3896_v33  ;;  %v3919_v33 = vld [vmem:[#allocation11 + $0x138] sm:$0xff]  }
 0x8f7   : > { %3518 = vmatprep.subr.bf16.mxu0 %v4289_v5 }
 0x8fa   : > { %3519 = vmatpush3.bf16.msra.mxu0 %v3897_v34  ;;  %v3920_v34 = vld [vmem:[#allocation13 + $0x100] sm:$0xff]  }
 0x8fb   : > { %3520 = vmatprep.subr.bf16.mxu0 %v4289_v5 }
 0x8fe   : > { %3521 = vmatpush3.bf16.msra.mxu0 %v3898_v35  ;;  %v3921_v35 = vld [vmem:[#allocation13 + $0x108] sm:$0xff]  }
 0x8ff   : > { %3522 = vmatprep.subr.bf16.mxu0 %v4289_v5 }
 0x902   : > { %3523 = vmatpush3.bf16.msra.mxu0 %v3899_v36  ;;  %v3922_v36 = vld [vmem:[#allocation13 + $0x110] sm:$0xff]  }
 0x903   : > { %3524 = vmatprep.subr.bf16.mxu0 %v4289_v5 }
 0x906   : > { %3525 = vmatpush3.bf16.msra.mxu0 %v3900_v37  ;;  %v3923_v37 = vld [vmem:[#allocation13 + $0x118] sm:$0xff]  }
 0x907   : > { %3526 = vmatprep.subr.bf16.mxu0 %v4289_v5 }
 0x90a   : > { %3527 = vmatpush3.bf16.msra.mxu0 %v3901_v48 }
 0x90b   : > { %3528 = vmatprep.subr.bf16.mxu0 %v4289_v5 }
 0x90e   : > { %3529 = vmatpush3.bf16.msra.mxu0 %v3902_v49 }
 0x90f   : > { %3530 = vmatprep.subr.bf16.mxu0 %v4289_v5 }
 0x912   : > { %3531 = vmatpush3.bf16.msra.mxu0 %v3903_v50 }
 0x913   : > { %3556 = vmatprep.subr.bf16.mxu0 %v4289_v5 }
 0x9c8   : > { %v2086_v39 = vpop.f32.mrb[20].mxu0 }
 0x9c9   : > { %v2087_v41 = vadd.f32 %v3127_v38, %v2086_v39  ;;  %v3494_v42 = vpop.f32.mrb[21].mxu0  ;;  %v3925_v39 = vld [vmem:[#allocation13 + $0x128] sm:$0xff]  }
 0x9ca   : > { %v2089_v43 = vpop.f32.mrb[22].mxu0 }
 0x9cb   : > { %v2090_v45 = vadd.f32 %v3127_v38, %v2089_v43  ;;  %v3495_v7 = vpop.f32.mrb[23].mxu0  ;;  %v2093_v46 = vmax.f32 %v2087_v41, 0.0  ;;  %v3924_v38 = vld [vmem:[#allocation13 + $0x120] sm:$0xff]   ;;  %v1160_v41 = vsub.s32 4, %v4700_v6 }
 0x9cd   : > { %v2094_v47 = vmax.f32 %v2090_v45, 0.0  ;;  %v1161_v42 = vrot.slane %v4805_v40, %v1160_v41  ;;  %v3157_v45 = vld [vmem:[%s5113_s30 + $0x3] ss:$0 sm:$0xff]  ;;  %v3926_v40 = vld [vmem:[#allocation13 + $0x130] sm:$0xff]  }
 0x9cf   : > { %v2114_v44 = vpack.c.bf16 %v2094_v47, %v2093_v46 }
 0x9d1   : > { %3513 = vmatmul.mubr.bf16.vlgmr.msra.gmra.mrb[20].mxu1 %v2114_v44 }
 0x9d2   : > { %3552 = vmatprep.mubr.msk.bf16.mxu1 %vm4290_vm5, %v4289_v5  ;;  %3537 = vmatpush3.bf16.msra.mxu1 %v3904_v51 }
 0x9d3   : > { %3538 = vmatprep.subr.bf16.mxu1 %v4289_v5 }
 0x9d6   : > { %3539 = vmatpush3.bf16.msra.mxu1 %v3905_v52 }
 0x9d7   : > { %3540 = vmatprep.subr.bf16.mxu1 %v4289_v5 }
 0x9da   : > { %3541 = vmatpush3.bf16.msra.mxu1 %v3906_v53 }
 0x9db   : > { %3542 = vmatprep.subr.bf16.mxu1 %v4289_v5 }
 0x9de   : > { %3543 = vmatpush3.bf16.msra.mxu1 %v3907_v54 }
 0x9df   : > { %3544 = vmatprep.subr.bf16.mxu1 %v4289_v5 }
 0x9e2   : > { %3545 = vmatpush3.bf16.msra.mxu1 %v3908_v55  ;;  %v3927_v55 = vld [vmem:[#allocation13 + $0x138] sm:$0xff]  }
 0x9e3   : > { %3546 = vmatprep.subr.bf16.mxu1 %v4289_v5 }
 0x9e6   : > { %3547 = vmatpush3.bf16.msra.mxu1 %v3909_v56  ;;  %v3928_v56 = vld [vmem:[#allocation14] sm:$0xff]  }
 0x9e7   : > { %3548 = vmatprep.subr.bf16.mxu1 %v4289_v5 }
 0x9ea   : > { %3549 = vmatpush3.bf16.msra.mxu1 %v3910_v60 }
 0x9eb   : > { %3550 = vmatprep.subr.bf16.mxu1 %v4289_v5 }
 0x9ee   : > { %3551 = vmatpush3.bf16.msra.mxu1 %v3911_v62 }
 0x9ef   : > { %3576 = vmatprep.subr.bf16.mxu1 %v4289_v5 }
 0xaa4   : > { %v2203_v63 = vpop.f32.mrb[20].mxu1 }
 0xaa5   : > { %v2204_v1 = vadd.f32 %v3137_v57, %v2203_v63  ;;  %v3514_v2 = vpop.f32.mrb[21].mxu1  ;;  %v3932_v63 = vld [vmem:[#allocation14 + $0x20] sm:$0xff]  }
 0xaa6   : > { %v2206_v3 = vpop.f32.mrb[22].mxu1 }
 0xaa7   : > { %v2210_v9 = vadd.f32 %v2204_v1, %v4899_v28  ;;  %v2207_v10 = vadd.f32 %v3137_v57, %v2206_v3  ;;  %v3515_v11 = vpop.f32.mrb[23].mxu1  ;;  %v3930_v57 = vld [vmem:[#allocation14 + $0x10] sm:$0xff]  }
 0xaa8   : > { %v3167_v1 = vld [vmem:[%s5112_s25 + $0x4] ss:$0 sm:$0xff] }
 0xaa9   : > { %v4937_v13 = vadd.f32 %v2210_v9, %v1455_v4  ;;  %v2211_v15 = vadd.f32 %v2207_v10, %v4902_v30 }
 0xaab   : > { %v4940_v0 = vadd.f32 %v2211_v15, %v1459_v12  ;;  %v2214_v16 = vmax.f32 %v4937_v13, 0.0  ;;  %v3616_v43 = vadd.f32 %v4937_v13, %v1161_v42 }
 0xaad   : > { %v2215_v17 = vmax.f32 %v4940_v0, 0.0  ;;  %v3619_v7 = vadd.f32 %v4940_v0, %v1161_v42  ;;  %v3617_v46 = vadd.f32 %v3616_v43, %v3157_v45  ;;  %v3933_v0 = vld [vmem:[#allocation14 + $0x28] sm:$0xff]  }
 0xaaf   : > { %v2235_v18 = vpack.c.bf16 %v2215_v17, %v2214_v16  ;;  %v3620_v49 = vadd.f32 %v3619_v7, %v3157_v45  ;;  %v3934_v16 = vld [vmem:[#allocation14 + $0x30] sm:$0xff]   ;;  %v3935_v17 = vld [vmem:[#allocation14 + $0x38] sm:$0xff]  }
 0xab1   : > { %3533 = vmatmul.mubr.bf16.vlgmr.msra.gmra.mrb[24].mxu0 %v2235_v18  ;;  %v3177_v18 = vld [vmem:[%s5113_s30 + $0x4] ss:$0 sm:$0xff] }
 0xab2   : > { %3572 = vmatprep.mubr.msk.bf16.mxu0 %vm4290_vm5, %v4289_v5  ;;  %3557 = vmatpush3.bf16.msra.mxu0 %v3912_v19 }
 0xab3   : > { %3558 = vmatprep.subr.bf16.mxu0 %v4289_v5 }
 0xab6   : > { %3559 = vmatpush3.bf16.msra.mxu0 %v3913_v20 }
 0xab7   : > { %3560 = vmatprep.subr.bf16.mxu0 %v4289_v5 }
 0xaba   : > { %3561 = vmatpush3.bf16.msra.mxu0 %v3914_v21 }
 0xabb   : > { %3562 = vmatprep.subr.bf16.mxu0 %v4289_v5 }
 0xabe   : > { %3563 = vmatpush3.bf16.msra.mxu0 %v3915_v22 }
 0xabf   : > { %3564 = vmatprep.subr.bf16.mxu0 %v4289_v5 }
 0xac2   : > { %3565 = vmatpush3.bf16.msra.mxu0 %v3916_v23 }
 0xac3   : > { %3566 = vmatprep.subr.bf16.mxu0 %v4289_v5 }
 0xac6   : > { %3567 = vmatpush3.bf16.msra.mxu0 %v3917_v24 }
 0xac7   : > { %3568 = vmatprep.subr.bf16.mxu0 %v4289_v5 }
 0xaca   : > { %3569 = vmatpush3.bf16.msra.mxu0 %v3918_v61 }
 0xacb   : > { %3570 = vmatprep.subr.bf16.mxu0 %v4289_v5 }
 0xace   : > { %3571 = vmatpush3.bf16.msra.mxu0 %v3919_v33 }
 0xacf   : > { %3596 = vmatprep.subr.bf16.mxu0 %v4289_v5 }
 0xb84   : > { %v2324_v26 = vpop.f32.mrb[24].mxu0 }
 0xb85   : > { %v2325_v27 = vadd.f32 %v3147_v25, %v2324_v26  ;;  %v3534_v28 = vpop.f32.mrb[25].mxu0 }
 0xb86   : > { %v2327_v29 = vpop.f32.mrb[26].mxu0 }
 0xb87   : > { %v2328_v30 = vadd.f32 %v3147_v25, %v2327_v29  ;;  %v3535_v14 = vpop.f32.mrb[27].mxu0  ;;  %v2331_v31 = vmax.f32 %v2325_v27, 0.0 }
 0xb89   : > { %v2332_v32 = vmax.f32 %v2328_v30, 0.0 }
 0xb8b   : > { %v2352_v59 = vpack.c.bf16 %v2332_v32, %v2331_v31 }
 0xb8d   : > { %3553 = vmatmul.mubr.bf16.vlgmr.msra.gmra.mrb[8].mxu1 %v2352_v59 }
 0xb8e   : > { %3592 = vmatprep.mubr.msk.bf16.mxu1 %vm4290_vm5, %v4289_v5  ;;  %3577 = vmatpush3.bf16.msra.mxu1 %v3920_v34 }
 0xb8f   : > { %3578 = vmatprep.subr.bf16.mxu1 %v4289_v5 }
 0xb92   : > { %3579 = vmatpush3.bf16.msra.mxu1 %v3921_v35 }
 0xb93   : > { %3580 = vmatprep.subr.bf16.mxu1 %v4289_v5 }
 0xb96   : > { %3581 = vmatpush3.bf16.msra.mxu1 %v3922_v36 }
 0xb97   : > { %3582 = vmatprep.subr.bf16.mxu1 %v4289_v5 }
 0xb9a   : > { %3583 = vmatpush3.bf16.msra.mxu1 %v3923_v37 }
 0xb9b   : > { %3584 = vmatprep.subr.bf16.mxu1 %v4289_v5 }
 0xb9e   : > { %3585 = vmatpush3.bf16.msra.mxu1 %v3924_v38 }
 0xb9f   : > { %3586 = vmatprep.subr.bf16.mxu1 %v4289_v5 }
 0xba2   : > { %3587 = vmatpush3.bf16.msra.mxu1 %v3925_v39 }
 0xba3   : > { %3588 = vmatprep.subr.bf16.mxu1 %v4289_v5 }
 0xba6   : > { %3589 = vmatpush3.bf16.msra.mxu1 %v3926_v40 }
 0xba7   : > { %3590 = vmatprep.subr.bf16.mxu1 %v4289_v5 }
 0xbaa   : > { %3591 = vmatpush3.bf16.msra.mxu1 %v3927_v55 }
 0xc60   : > { %v2441_v47 = vpop.f32.mrb[8].mxu1 }
 0xc61   : > { %v3618_v44 = vadd.f32 %v3617_v46, %v2441_v47  ;;  %v3554_v48 = vpop.f32.mrb[9].mxu1 }
 0xc62   : > { %v2444_v50 = vpop.f32.mrb[10].mxu1 }
 0xc63   : > { %v3621_v51 = vadd.f32 %v3620_v49, %v2444_v50  ;;  %v3555_v52 = vpop.f32.mrb[11].mxu1  ;;  %v2452_v53 = vmax.f32 %v3618_v44, 0.0 }
 0xc65   : > { %v2453_v6 = vmax.f32 %v3621_v51, 0.0 }
 0xc67   : > { %v2473_v54 = vpack.c.bf16 %v2453_v6, %v2452_v53 }
 0xc69   : > { %3573 = vmatmul.mubr.bf16.vlgmr.msra.gmra.mrb[28].mxu0 %v2473_v54 }
 0xc6a   : > { %3612 = vmatprep.mubr.msk.bf16.mxu0 %vm4290_vm5, %v4289_v5  ;;  %3597 = vmatpush3.bf16.msra.mxu0 %v3928_v56 }
 0xc6b   : > { %3598 = vmatprep.subr.bf16.mxu0 %v4289_v5 }
 0xc6e   : > { %3599 = vmatpush3.bf16.msra.mxu0 %v3929_v8 }
 0xc6f   : > { %3600 = vmatprep.subr.bf16.mxu0 %v4289_v5 }
 0xc72   : > { %3601 = vmatpush3.bf16.msra.mxu0 %v3930_v57 }
 0xc73   : > { %3602 = vmatprep.subr.bf16.mxu0 %v4289_v5 }
 0xc76   : > { %3603 = vmatpush3.bf16.msra.mxu0 %v3931_v58 }
 0xc77   : > { %3604 = vmatprep.subr.bf16.mxu0 %v4289_v5 }
 0xc7a   : > { %3605 = vmatpush3.bf16.msra.mxu0 %v3932_v63 }
 0xc7b   : > { %3606 = vmatprep.subr.bf16.mxu0 %v4289_v5 }
 0xc7e   : > { %3607 = vmatpush3.bf16.msra.mxu0 %v3933_v0 }
 0xc7f   : > { %3608 = vmatprep.subr.bf16.mxu0 %v4289_v5 }
 0xc82   : > { %3609 = vmatpush3.bf16.msra.mxu0 %v3934_v16 }
 0xc83   : > { %3610 = vmatprep.subr.bf16.mxu0 %v4289_v5  ;;  %v3186_v5 = vld [vmem:[%s5114_s28] ss:$0 sm:$0xff]  ;;  %s4180_s28 = scalar_lea.vmem %s4179_s27, 512 }
 0xc84   : > { %p4182_p9 = scmp.lt.s32.totalorder %s4180_s28, %s4174_s26 }
 0xc86   : > { %3611 = vmatpush3.bf16.msra.mxu0 %v3935_v17  ;;  %p4183_p8 = por %p4182_p9, %p4181_p4 }
 0xc88   : > { %p4184_p3 = pnand %p4183_p8, %p4177_p2 }
 0xd3c   : > { %v2562_v2 = vpop.f32.mrb[28].mxu0 }
 0xd3d   : > { %v2563_v3 = vadd.f32 %v3167_v1, %v2562_v2  ;;  %v3574_v4 = vpop.f32.mrb[29].mxu0 }
 0xd3e   : > { %v2565_v9 = vpop.f32.mrb[30].mxu0 }
 0xd3f   : > { %v2566_v10 = vadd.f32 %v3167_v1, %v2565_v9  ;;  %v3575_v11 = vpop.f32.mrb[31].mxu0  ;;  %v2569_v12 = vmax.f32 %v2563_v3, 0.0 }
 0xd41   : > { %v2570_v13 = vmax.f32 %v2566_v10, 0.0 }
 0xd43   : > { %v2590_v15 = vpack.c.bf16 %v2570_v13, %v2569_v12 }
 0xd45   : > { %3593 = vmatmul.mubr.bf16.vlgmr.msra.gmra.mrb[24].mxu1 %v2590_v15 }
 0xe18   : > { %v2679_v60 = vpop.f32.mrb[24].mxu1 }
 0xe19   : > { %v2680_v62 = vadd.f32 %v3177_v18, %v2679_v60  ;;  %v3594_v19 = vpop.f32.mrb[25].mxu1 }
 0xe1a   : > { %v2682_v20 = vpop.f32.mrb[26].mxu1 }
 0xe1b   : > { %v2686_v21 = vadd.f32 %v3618_v44, %v2680_v62  ;;  %v2683_v22 = vadd.f32 %v3177_v18, %v2682_v20  ;;  %v3595_v23 = vpop.f32.mrb[27].mxu1 }
 0xe1d   : > { %v2687_v24 = vadd.f32 %v3621_v51, %v2683_v22  ;;  %v2688_v25 = vmax.f32 %v2686_v21, 0.0 }
 0xe1f   : > { %v2689_v26 = vmax.f32 %v2687_v24, 0.0 }
 0xe21   : > { %v2707_v27 = vpack.c.bf16 %v2689_v26, %v2688_v25 }
 0xe23   : > { %3613 = vmatmul.mubr.bf16.vlgmr.msra.gmra.mrb[32].mxu0 %v2707_v27 }
 0xef6   : > { %v2796_v28 = vpop.f32.mrb[32].mxu0 }
 0xef7   : > { %v2797_v29 = vadd.f32 %v3186_v5, %v2796_v28  ;;  %v3614_v30 = vpop.f32.mrb[33].mxu0 }
 0xef8   : > { %v2799_v14 = vpop.f32.mrb[34].mxu0 }
 0xef9   : > { %2803 = vst [vmem:[%s660_s15] sm:$0xff] %v2797_v29  ;;  %v2800_v31 = vadd.f32 %v3186_v5, %v2799_v14  ;;  %v3615_v32 = vpop.f32.mrb[35].mxu0 }
 0xefb   : > { %2804 = vst [vmem:[%s660_s15 + $0x8] sm:$0xff] %v2800_v31 }
 0xefc   : > { %4187 = shalt.err (!%p4184_p3)
}
 0xefd   : > { %s4188_s15 = scalar_lea.hbm %s5000_s16, 256  ;;  %s4192_s17 = scalar_lea.hbm %s5115_s10, 512 }
 0xefe   : > { %p4189_p12 = scmp.ne.s32.totalorder %s5000_s16, %s4188_s15  ;;  %p4193_p11 = scmp.lt.u32.totalorder %s5000_s16, %s5115_s10 }
 0xeff   : > { %p4194_p7 = scmp.lt.u32.totalorder %s4192_s17, %s4188_s15  ;;  %p4196_p5 = scmp.lt.u32.totalorder %s4188_s15, %s5000_s16 }
 0xf00   : > { %p4190_p13 = pnand %p4189_p12, %p5116_p10 }
 0xf01   : > { %p4195_p6 = por %p4194_p7, %p4193_p11 }
 0xf02   : > { %p4191_p0 = pneg %p4190_p13 }
 0xf03   : > { %p4197_p1 = por %p4196_p5, %p4195_p6 }
 0xf05   : > { %p4198_p2 = pnand %p4197_p1, %p4191_p0 }
 0xf07   : > { %4201 = shalt.err (!%p4198_p2)
}
 0xf08   : > { %s4292_s26 = smov 128   ;;  %s4293_s28 = smov 8  }
 0xf09   : > { %3656 = dma.vmem_to_hbm [thread:$0]  (%p5116_p10), %s4995_s1, 256, %s5000_s16, %s2806_s24, %s4292_s26, %s4292_s26, %s4293_s28  }
 0xf0a PF: > { %s2836_s21 = sand.u32 1, %s4252_s18   ;;  %p5117_p4 = scmp.ne.s32.totalorder %s5103_s5, 0 }
 0xf0b   : > { %p5118_p9 = scmp.ge.s32.totalorder %s4272_s23, 2  ;;  %s2837_s15 = scalar_lea.sflag [#allocation4], %s2836_s21 }
 0xf0d   : > { %p3685_p8 = pnand %p5118_p9, %p5117_p4 }
 0xf0f   : > { %4247 = dma.done.wait (!%p3685_p8), %s2837_s15, 256  }
 0xf10   : > { %4249 = vsyncadd (!%p3685_p8), %s2837_s15, 4294967040  ;;  %s35_s23 = sadd.s32 1, %s4272_s23   ;;  %s5119_s18 = smov %s4256_s19 }
 0xf11   : > { %p32_p3 = scmp.ge.s32.totalorder %s35_s23, 4   ;;  %s5120_s19 = smov %s4260_s20 }
 0xf12   : > { %s5121_s20 = smov %s4618_s0  ;;  %s5122_s21 = smov %s4268_s22 }
 0xf13   : > { %s5123_s22 = smov %s5125_s29  ;;  %34 = sbr.rel (!%p32_p3) target bundleno = 21 (0x15), region = 175 }
 0xf1a   :  { %2842 = vsyncpa [#allocation3], 1 }
 0xf1b   :  { %2844 = vsyncpa [#allocation3 + $0x1], 1 }
 0xf1c   :  { %2845 = vsyncpa [#allocation6], 1 }
 0xf1d   :  { %2846 = vsyncpa [#allocation9], 1 }
 0xf1e   :  { %2847 = vsyncpa [#allocation12], 1 }
 0xf1f   :  { %2848 = vsyncpa [#allocation15], 1 }
 0xf20   :  { %2849 = vsyncpa [#allocation4], 1 }
 0xf21   :  { %2851 = vsyncpa [#allocation4 + $0x1], 1 }

</bundles_post_ra>
